<compile_context>
chip_gen: v6e
topology: v6e:2x2x1
jax: 0.10.0
libtpu: 0.0.40
codegen_flags: <defaults>
</compile_context>

<pallas_src>
import functools

import jax
import jax.numpy as jnp
import numpy as np
from jax import lax
from jax.experimental import pallas as pl
from jax.experimental.pallas import tpu as pltpu

# ---- model hyper-parameters (small, consistent with the module) -------------
INPUT_SIZE = 8      # len(hostnames)
HIDDEN_SIZE = 32    # hidden_size (4*H = 128 lanes = one vreg row per layer)
NUM_LAYERS = 2      # the wavefront fusion below is written for exactly 2 layers
OUTPUT_SIZE = 8     # len(hostnames)
BATCH = 2
SEQ = 8


def fused_lstm_kernel(x_ref, st0_ref, w_in_ref, w_all_ref, b_ref,
                      out_ref, gx_scr, h_scr, *, T, H, BP):
    """Wavefront-fused 2-layer LSTM + FC head.

    Gate-column layout (width H each): [i0,i1,f0,f1,g0,g1,o0,o1]
    (even = layer 0, odd = layer 1; PyTorch gate order i,f,g,o).
    Packed state layout along lanes: [layer0 | layer1] (2H wide).
    """
    G = 8 * H            # fused gate width (2 layers x 4 gates x H)
    H2 = 2 * H           # packed state width

    # ---- hoisted layer-0 input projection (+ gate biases) -> VMEM scratch ---
    gx_scr[...] = (jnp.dot(x_ref[...], w_in_ref[...],
                           preferred_element_type=jnp.float32)
                   + b_ref[:, :G])

    # ---- packed initial state: [h_l0 | h_l1], [c_l0 | c_l1] -----------------
    h_cat = st0_ref[:, :H2]                    # (BP, 2H) f32
    c_cat = st0_ref[:, H2:]                    # (BP, 2H) f32

    # Block recurrent weight [[W_hh0, W_ih1], [0, W_hh1]] (bf16), held once.
    w_rec = w_all_ref[:, :G]                   # (2H, 8H) bf16

    lane = lax.broadcasted_iota(jnp.int32, (BP, H2), 1)
    is_l0 = lane < H                           # layer-0 lanes of packed state
    is_l1 = lane >= H                          # layer-1 lanes of packed state

    # ---- wavefront: round s = layer-0 step s  +  layer-1 step s-1 -----------
    for s in range(T + 1):
        add = gx_scr[s * BP:(s + 1) * BP, :]                      # (BP, 8H) f32
        gates = add + jnp.dot(h_cat.astype(jnp.bfloat16), w_rec,
                              preferred_element_type=jnp.float32)
        sig = jax.nn.sigmoid(gates)     # one EUP pass over all 8 gate blocks
        tg = jnp.tanh(gates)            # one EUP pass over all 8 gate blocks
        i_c = sig[:, 0 * H2:1 * H2]     # [i_l0 | i_l1]
        f_c = sig[:, 1 * H2:2 * H2]     # [f_l0 | f_l1]
        g_c = tg[:, 2 * H2:3 * H2]      # [g_l0 | g_l1]
        o_c = sig[:, 3 * H2:4 * H2]     # [o_l0 | o_l1]
        c_new = f_c * c_cat + i_c * g_c
        h_new = o_c * jnp.tanh(c_new)   # single EUP push for both layers
        if s == 0:
            # Layer 1 has not started: preserve its initial state.
            c_cat = jnp.where(is_l0, c_new, c_cat)
            h_cat = jnp.where(is_l0, h_new, h_cat)
        elif s < T:
            c_cat = c_new
            h_cat = h_new
        else:
            # Layer 0 finished at round T-1: preserve its final state (h_n/c_n).
            c_cat = jnp.where(is_l1, c_new, c_cat)
            h_cat = jnp.where(is_l1, h_new, h_cat)
        if s >= 1:
            # Layer-1 hidden for time step s-1 lives in lanes H:2H; the zero
            # layer-0 rows of the FC weight ignore the other half.
            h_scr[(s - 1) * BP:s * BP, :] = h_cat

    # ---- FC head over all per-step layer-1 hiddens (lane-dense output) ------
    w_fc = w_all_ref[:, G:]                    # (2H, 128) bf16, rows 0:H zero
    fc_b = b_ref[:, G:]                        # (1, 128) f32
    logits = (jnp.dot(h_scr[...].astype(jnp.bfloat16), w_fc,
                      preferred_element_type=jnp.float32) + fc_b)
    out_ref[:T * BP, :] = logits                                  # rows t*BP+b
    out_ref[T * BP:, :] = jnp.concatenate([h_cat, c_cat], axis=1)  # [hn|cn]


def _pack_params(params):
    """Pack per-layer LSTM + FC weights into fused, gate-interleaved slabs."""
    H, O = HIDDEN_SIZE, OUTPUT_SIZE
    (w_ih0, w_hh0, b0), (w_ih1, w_hh1, b1) = params["layers"]
    d_in = w_ih0.shape[0]

    def gblk(w):                     # (rows, 4H) -> 4 x (rows, H), order i,f,g,o
        return [w[:, k * H:(k + 1) * H] for k in range(4)]

    wih0_g, whh0_g = gblk(w_ih0), gblk(w_hh0)
    wih1_g, whh1_g = gblk(w_ih1), gblk(w_hh1)
    b0_g, b1_g = gblk(b0), gblk(b1)

    # Input->gates weight: layer-1 columns are zero (layer-1's "input" comes
    # from h_l0 through the recurrent block weight below).
    z_in = jnp.zeros((d_in, H), jnp.float32)
    w_in = jnp.concatenate(
        [blk for k in range(4) for blk in (wih0_g[k], z_in)], axis=1)

    # Block recurrent weight for hcat = [h_l0 | h_l1]:
    #   even gate blocks (layer 0): [[W_hh0], [0]]
    #   odd  gate blocks (layer 1): [[W_ih1], [W_hh1]]
    z_hh = jnp.zeros((H, H), jnp.float32)
    cols = []
    for k in range(4):
        cols.append(jnp.concatenate([whh0_g[k], z_hh], axis=0))
        cols.append(jnp.concatenate([wih1_g[k], whh1_g[k]], axis=0))
    w_rec = jnp.concatenate(cols, axis=1)                        # (2H, 8H)

    # FC weight padded to 128 output lanes, acting on [h_l0 | h_l1]
    # (layer-0 rows zero).
    w_fc = jnp.concatenate(
        [jnp.zeros((H, 128), jnp.float32),
         jnp.pad(params["fc_w_t"], ((0, 0), (0, 128 - O)))], axis=0)

    w_all = jnp.concatenate([w_rec, w_fc], axis=1).astype(jnp.bfloat16)
    w_in = w_in.astype(jnp.bfloat16)

    gate_b = jnp.concatenate(
        [blk for k in range(4) for blk in (b0_g[k], b1_g[k])], axis=1)
    fc_b = jnp.pad(params["fc_b2d"], ((0, 0), (0, 128 - O)))
    biases = jnp.concatenate([gate_b, fc_b], axis=1)             # (1, 8H+128)
    return w_in, w_all, biases


def lstm_module_forward(x, params, hs=None):
    """x: (B, T, input_size) batch_first.

    Returns (out (B*T, output_size), (h_n, c_n)) matching the PyTorch module.
    """
    B, T, d_in = x.shape
    H, L, O = HIDDEN_SIZE, NUM_LAYERS, OUTPUT_SIZE
    BP = max(8, ((B + 7) // 8) * 8)            # batch padded to f32 sublanes
    DP = ((d_in + 15) // 16) * 16              # input feature dim padded

    if hs is None:
        h0 = jnp.zeros((L, B, H), jnp.float32)
        c0 = jnp.zeros((L, B, H), jnp.float32)
    else:
        h0, c0 = hs

    # Time-major, batch-padded input with one extra zero wavefront step.
    x_tm = jnp.transpose(x, (1, 0, 2))                           # (T, B, Din)
    x_tm = jnp.pad(x_tm, ((0, 1), (0, BP - B), (0, DP - d_in)))  # (T+1, BP, DP)
    x_tm = x_tm.reshape((T + 1) * BP, DP).astype(jnp.bfloat16)

    # Packed initial state [h_l0 | h_l1 | c_l0 | c_l1], batch-padded.
    st0 = jnp.concatenate([h0[0], h0[1], c0[0], c0[1]], axis=1)  # (B, 4H)
    st0 = jnp.pad(st0, ((0, BP - B), (0, 0)))

    w_in, w_all, biases = _pack_params(params)
    w_in = jnp.pad(w_in, ((0, DP - d_in), (0, 0)))               # (DP, 8H)

    kernel = functools.partial(fused_lstm_kernel, T=T, H=H, BP=BP)
    packed = pl.pallas_call(
        kernel,
        out_shape=jax.ShapeDtypeStruct(((T + 1) * BP, 128), jnp.float32),
        grid_spec=pltpu.PrefetchScalarGridSpec(
            num_scalar_prefetch=0,
            grid=(1,),                                           # single TC pass
            in_specs=[
                pl.BlockSpec(((T + 1) * BP, DP), lambda i: (0, 0)),      # x (tm)
                pl.BlockSpec((BP, 4 * H), lambda i: (0, 0)),             # state0
                pl.BlockSpec((DP, 8 * H), lambda i: (0, 0)),             # w_in
                pl.BlockSpec((2 * H, 8 * H + 128), lambda i: (0, 0)),    # w_rec|fc
                pl.BlockSpec((1, 8 * H + 128), lambda i: (0, 0)),        # biases
            ],
            out_specs=pl.BlockSpec(((T + 1) * BP, 128), lambda i: (0, 0)),
            scratch_shapes=[
                pltpu.VMEM(((T + 1) * BP, 8 * H), jnp.float32),  # gx slabs
                pltpu.VMEM((T * BP, 2 * H), jnp.float32),        # per-step h
            ],
        ),
        compiler_params=pltpu.CompilerParams(
            dimension_semantics=("arbitrary",)),
    )(x_tm, st0, w_in, w_all, biases)

    # ---- unpack in the wrapper (cheap XLA ops, outside the kernel) ----------
    logits_tm = packed[:T * BP, :O].reshape(T, BP, O)[:, :B, :]
    out = jnp.transpose(logits_tm, (1, 0, 2)).reshape(B * T, O)  # row = b*T + t
    st = packed[T * BP:T * BP + BP, :]                           # (BP, 128)
    h_n = jnp.stack([st[:B, 0 * H:1 * H], st[:B, 1 * H:2 * H]])
    c_n = jnp.stack([st[:B, 2 * H:3 * H], st[:B, 3 * H:4 * H]])
    return out, (h_n, c_n)


# ---------------------------------------------------------------------------
# Pure-JAX reference (for correctness check)
# ---------------------------------------------------------------------------
def lstm_module_reference(x, params):
    B, T, _ = x.shape
    H = HIDDEN_SIZE
    layer_in = jnp.transpose(x, (1, 0, 2))            # (T, B, D)
    h_fins, c_fins = [], []
    for l in range(NUM_LAYERS):
        w_ih_t, w_hh_t, bias = params["layers"][l]

        def step(carry, x_t):
            h, c = carry
            gates = x_t @ w_ih_t + h @ w_hh_t + bias[0]
            i = jax.nn.sigmoid(gates[:, 0 * H:1 * H])
            f = jax.nn.sigmoid(gates[:, 1 * H:2 * H])
            g = jnp.tanh(gates[:, 2 * H:3 * H])
            o = jax.nn.sigmoid(gates[:, 3 * H:4 * H])
            c = f * c + i * g
            h = o * jnp.tanh(c)
            return (h, c), h

        init = (jnp.zeros((B, H), jnp.float32), jnp.zeros((B, H), jnp.float32))
        (h_f, c_f), outs = lax.scan(step, init, layer_in)
        h_fins.append(h_f)
        c_fins.append(c_f)
        layer_in = outs
    out = jnp.transpose(layer_in, (1, 0, 2)).reshape(-1, H)
    logits = out @ params["fc_w_t"] + params["fc_b2d"][0]
    return logits, (jnp.stack(h_fins), jnp.stack(c_fins))


# ---------------------------------------------------------------------------
# Deterministic parameter init (PyTorch-style uniform(-1/sqrt(H), 1/sqrt(H)))
# ---------------------------------------------------------------------------
def init_params(key):
    bound = 1.0 / np.sqrt(HIDDEN_SIZE)
    params = {"layers": []}
    for l in range(NUM_LAYERS):
        d_in = INPUT_SIZE if l == 0 else HIDDEN_SIZE
        key, k1, k2, k3, k4 = jax.random.split(key, 5)
        w_ih = jax.random.uniform(k1, (4 * HIDDEN_SIZE, d_in), jnp.float32,
                                  -bound, bound)
        w_hh = jax.random.uniform(k2, (4 * HIDDEN_SIZE, HIDDEN_SIZE),
                                  jnp.float32, -bound, bound)
        b_ih = jax.random.uniform(k3, (4 * HIDDEN_SIZE,), jnp.float32,
                                  -bound, bound)
        b_hh = jax.random.uniform(k4, (4 * HIDDEN_SIZE,), jnp.float32,
                                  -bound, bound)
        params["layers"].append((w_ih.T, w_hh.T,
                                 (b_ih + b_hh).reshape(1, 4 * HIDDEN_SIZE)))
    key, k5, k6 = jax.random.split(key, 3)
    fc_bound = 1.0 / np.sqrt(HIDDEN_SIZE)
    fc_w = jax.random.uniform(k5, (OUTPUT_SIZE, HIDDEN_SIZE), jnp.float32,
                              -fc_bound, fc_bound)
    fc_b = jax.random.uniform(k6, (OUTPUT_SIZE,), jnp.float32,
                              -fc_bound, fc_bound)
    params["fc_w_t"] = fc_w.T
    params["fc_b2d"] = fc_b.reshape(1, OUTPUT_SIZE)
    return params


if __name__ == "__main__":
    key = jax.random.PRNGKey(0)
    key, kx = jax.random.split(key)
    params = init_params(key)
    x = jax.random.normal(kx, (BATCH, SEQ, INPUT_SIZE), jnp.float32)

    out, (h_n, c_n) = lstm_module_forward(x, params, hs=None)
    out = jax.block_until_ready(out)
    h_n = jax.block_until_ready(h_n)
    c_n = jax.block_until_ready(c_n)

    assert out.shape == (BATCH * SEQ, OUTPUT_SIZE)
    assert h_n.shape == (NUM_LAYERS, BATCH, HIDDEN_SIZE)
    assert c_n.shape == (NUM_LAYERS, BATCH, HIDDEN_SIZE)

    # Tolerance accounts for bf16 MXU operands in the kernel vs. the f32
    # (default-precision) pure-JAX reference.
    ref_out, (ref_h, ref_c) = lstm_module_reference(x, params)
    np.testing.assert_allclose(np.asarray(out), np.asarray(ref_out),
                               rtol=2e-2, atol=2e-2)
    np.testing.assert_allclose(np.asarray(h_n), np.asarray(ref_h),
                               rtol=2e-2, atol=2e-2)
    np.testing.assert_allclose(np.asarray(c_n), np.asarray(ref_c),
                               rtol=2e-2, atol=2e-2)

    print("KERNEL_OK")
</pallas_src>

<mosaic_0001>
module attributes {stable_mosaic.version = 11 : i64} {
  func.func @fused_lstm_kernel(%arg0: i32, %arg1: memref<72x16xbf16, #tpu.memory_space<vmem>>, %arg2: memref<8x128xf32, #tpu.memory_space<vmem>>, %arg3: memref<16x256xbf16, #tpu.memory_space<vmem>>, %arg4: memref<64x384xbf16, #tpu.memory_space<vmem>>, %arg5: memref<1x384xf32, #tpu.memory_space<vmem>>, %arg6: memref<72x128xf32, #tpu.memory_space<vmem>>, %arg7: memref<72x256xf32, #tpu.memory_space<vmem>>, %arg8: memref<64x64xf32, #tpu.memory_space<vmem>>) attributes {dimension_semantics = [#tpu.dimension_semantics<arbitrary>], iteration_bounds = array<i64: 1>, scalar_prefetch = 0 : i64, scratch_operands = 2 : i64, tpu.core_type = #tpu.core_type<tc>, window_params = [{pipeline_mode = #tpu.pipeline_mode<synchronous>, transform_indices = @transform_0, window_bounds = array<i64: 72, 16>}, {pipeline_mode = #tpu.pipeline_mode<synchronous>, transform_indices = @transform_1, window_bounds = array<i64: 8, 128>}, {pipeline_mode = #tpu.pipeline_mode<synchronous>, transform_indices = @transform_2, window_bounds = array<i64: 16, 256>}, {pipeline_mode = #tpu.pipeline_mode<synchronous>, transform_indices = @transform_3, window_bounds = array<i64: 64, 384>}, {pipeline_mode = #tpu.pipeline_mode<synchronous>, transform_indices = @transform_4, window_bounds = array<i64: 1, 384>}, {pipeline_mode = #tpu.pipeline_mode<synchronous>, transform_indices = @transform_5, window_bounds = array<i64: 72, 128>}]} {
    %c0 = arith.constant 0 : index
    %c0_0 = arith.constant 0 : index
    %0 = vector.load %arg1[%c0, %c0_0] : memref<72x16xbf16, #tpu.memory_space<vmem>>, vector<72x16xbf16>
    %c0_1 = arith.constant 0 : index
    %c0_2 = arith.constant 0 : index
    %1 = vector.load %arg3[%c0_1, %c0_2] : memref<16x256xbf16, #tpu.memory_space<vmem>>, vector<16x256xbf16>
    %cst = arith.constant dense<0.000000e+00> : vector<72x256xf32>
    %2 = tpu.matmul %0, %1, %cst {dimension_numbers = #tpu.dot_dimension_numbers<[1], [0], [0], [1], [0, 0, 1, 1], [], []>} : vector<72x16xbf16>, vector<16x256xbf16>, vector<72x256xf32> -> vector<72x256xf32>
    %c0_3 = arith.constant 0 : index
    %c0_4 = arith.constant 0 : index
    %3 = vector.load %arg5[%c0_3, %c0_4] : memref<1x384xf32, #tpu.memory_space<vmem>>, vector<1x256xf32>
    %4 = vector.broadcast %3 : vector<1x256xf32> to vector<72x256xf32>
    %5 = arith.addf %2, %4 : vector<72x256xf32>
    %c0_5 = arith.constant 0 : index
    %c0_6 = arith.constant 0 : index
    %6 = vector.load %arg7[%c0_5, %c0_6] : memref<72x256xf32, #tpu.memory_space<vmem>>, vector<72x256xf32>
    tpu.vector_store %arg7[%c0_5, %c0_6], %5 {strides = array<i32>} : memref<72x256xf32, #tpu.memory_space<vmem>>, vector<72x256xf32>,
    %c0_7 = arith.constant 0 : index
    %c0_8 = arith.constant 0 : index
    %7 = vector.load %arg2[%c0_7, %c0_8] : memref<8x128xf32, #tpu.memory_space<vmem>>, vector<8x64xf32>
    %c0_9 = arith.constant 0 : index
    %c64 = arith.constant 64 : index
    %8 = vector.load %arg2[%c0_9, %c64] : memref<8x128xf32, #tpu.memory_space<vmem>>, vector<8x64xf32>
    %c0_10 = arith.constant 0 : index
    %c0_11 = arith.constant 0 : index
    %9 = vector.load %arg4[%c0_10, %c0_11] : memref<64x384xbf16, #tpu.memory_space<vmem>>, vector<64x256xbf16>
    %10 = tpu.iota {dimensions = array<i32: 1>} : vector<8x64xi32>
    %c32_i32 = arith.constant 32 : i32
    %11 = vector.broadcast %c32_i32 : i32 to vector<8x64xi32>
    %12 = arith.cmpi slt, %10, %11 : vector<8x64xi32>
    %c32_i32_12 = arith.constant 32 : i32
    %13 = vector.broadcast %c32_i32_12 : i32 to vector<8x64xi32>
    %14 = arith.cmpi sge, %10, %13 : vector<8x64xi32>
    %c0_13 = arith.constant 0 : index
    %c0_14 = arith.constant 0 : index
    %15 = vector.load %arg7[%c0_13, %c0_14] : memref<72x256xf32, #tpu.memory_space<vmem>>, vector<8x256xf32>
    %16 = arith.truncf %7 : vector<8x64xf32> to vector<8x64xbf16>
    %cst_15 = arith.constant dense<0.000000e+00> : vector<8x256xf32>
    %17 = tpu.matmul %16, %9, %cst_15 {dimension_numbers = #tpu.dot_dimension_numbers<[1], [0], [0], [1], [0, 0, 1, 1], [], []>} : vector<8x64xbf16>, vector<64x256xbf16>, vector<8x256xf32> -> vector<8x256xf32>
    %18 = arith.addf %15, %17 : vector<8x256xf32>
    %19 = arith.negf %18 : vector<8x256xf32>
    %20 = math.exp %19 : vector<8x256xf32>
    %cst_16 = arith.constant 1.000000e+00 : f32
    %21 = vector.broadcast %cst_16 : f32 to vector<8x256xf32>
    %22 = arith.addf %21, %20 : vector<8x256xf32>
    %23 = arith.divf %21, %22 : vector<8x256xf32>
    %24 = math.tanh %18 : vector<8x256xf32>
    %25 = vector.extract_strided_slice %23 {offsets = [0, 0], sizes = [8, 64], strides = [1, 1]} : vector<8x256xf32> to vector<8x64xf32>
    %26 = vector.extract_strided_slice %23 {offsets = [0, 64], sizes = [8, 64], strides = [1, 1]} : vector<8x256xf32> to vector<8x64xf32>
    %27 = vector.extract_strided_slice %24 {offsets = [0, 128], sizes = [8, 64], strides = [1, 1]} : vector<8x256xf32> to vector<8x64xf32>
    %28 = vector.extract_strided_slice %23 {offsets = [0, 192], sizes = [8, 64], strides = [1, 1]} : vector<8x256xf32> to vector<8x64xf32>
    %29 = arith.mulf %26, %8 : vector<8x64xf32>
    %30 = arith.mulf %25, %27 : vector<8x64xf32>
    %31 = arith.addf %29, %30 : vector<8x64xf32>
    %32 = math.tanh %31 : vector<8x64xf32>
    %33 = arith.mulf %28, %32 : vector<8x64xf32>
    %34 = arith.select %12, %31, %8 : vector<8x64xi1>, vector<8x64xf32>
    %35 = arith.select %12, %33, %7 : vector<8x64xi1>, vector<8x64xf32>
    %c8 = arith.constant 8 : index
    %c0_17 = arith.constant 0 : index
    %36 = vector.load %arg7[%c8, %c0_17] : memref<72x256xf32, #tpu.memory_space<vmem>>, vector<8x256xf32>
    %37 = arith.truncf %35 : vector<8x64xf32> to vector<8x64xbf16>
    %cst_18 = arith.constant dense<0.000000e+00> : vector<8x256xf32>
    %38 = tpu.matmul %37, %9, %cst_18 {dimension_numbers = #tpu.dot_dimension_numbers<[1], [0], [0], [1], [0, 0, 1, 1], [], []>} : vector<8x64xbf16>, vector<64x256xbf16>, vector<8x256xf32> -> vector<8x256xf32>
    %39 = arith.addf %36, %38 : vector<8x256xf32>
    %40 = arith.negf %39 : vector<8x256xf32>
    %41 = math.exp %40 : vector<8x256xf32>
    %cst_19 = arith.constant 1.000000e+00 : f32
    %42 = vector.broadcast %cst_19 : f32 to vector<8x256xf32>
    %43 = arith.addf %42, %41 : vector<8x256xf32>
    %44 = arith.divf %42, %43 : vector<8x256xf32>
    %45 = math.tanh %39 : vector<8x256xf32>
    %46 = vector.extract_strided_slice %44 {offsets = [0, 0], sizes = [8, 64], strides = [1, 1]} : vector<8x256xf32> to vector<8x64xf32>
    %47 = vector.extract_strided_slice %44 {offsets = [0, 64], sizes = [8, 64], strides = [1, 1]} : vector<8x256xf32> to vector<8x64xf32>
    %48 = vector.extract_strided_slice %45 {offsets = [0, 128], sizes = [8, 64], strides = [1, 1]} : vector<8x256xf32> to vector<8x64xf32>
    %49 = vector.extract_strided_slice %44 {offsets = [0, 192], sizes = [8, 64], strides = [1, 1]} : vector<8x256xf32> to vector<8x64xf32>
    %50 = arith.mulf %47, %34 : vector<8x64xf32>
    %51 = arith.mulf %46, %48 : vector<8x64xf32>
    %52 = arith.addf %50, %51 : vector<8x64xf32>
    %53 = math.tanh %52 : vector<8x64xf32>
    %54 = arith.mulf %49, %53 : vector<8x64xf32>
    %c0_20 = arith.constant 0 : index
    %c0_21 = arith.constant 0 : index
    %55 = vector.load %arg8[%c0_20, %c0_21] : memref<64x64xf32, #tpu.memory_space<vmem>>, vector<8x64xf32>
    tpu.vector_store %arg8[%c0_20, %c0_21], %54 {strides = array<i32>} : memref<64x64xf32, #tpu.memory_space<vmem>>, vector<8x64xf32>,
    %c16 = arith.constant 16 : index
    %c0_22 = arith.constant 0 : index
    %56 = vector.load %arg7[%c16, %c0_22] : memref<72x256xf32, #tpu.memory_space<vmem>>, vector<8x256xf32>
    %57 = arith.truncf %54 : vector<8x64xf32> to vector<8x64xbf16>
    %cst_23 = arith.constant dense<0.000000e+00> : vector<8x256xf32>
    %58 = tpu.matmul %57, %9, %cst_23 {dimension_numbers = #tpu.dot_dimension_numbers<[1], [0], [0], [1], [0, 0, 1, 1], [], []>} : vector<8x64xbf16>, vector<64x256xbf16>, vector<8x256xf32> -> vector<8x256xf32>
    %59 = arith.addf %56, %58 : vector<8x256xf32>
    %60 = arith.negf %59 : vector<8x256xf32>
    %61 = math.exp %60 : vector<8x256xf32>
    %cst_24 = arith.constant 1.000000e+00 : f32
    %62 = vector.broadcast %cst_24 : f32 to vector<8x256xf32>
    %63 = arith.addf %62, %61 : vector<8x256xf32>
    %64 = arith.divf %62, %63 : vector<8x256xf32>
    %65 = math.tanh %59 : vector<8x256xf32>
    %66 = vector.extract_strided_slice %64 {offsets = [0, 0], sizes = [8, 64], strides = [1, 1]} : vector<8x256xf32> to vector<8x64xf32>
    %67 = vector.extract_strided_slice %64 {offsets = [0, 64], sizes = [8, 64], strides = [1, 1]} : vector<8x256xf32> to vector<8x64xf32>
    %68 = vector.extract_strided_slice %65 {offsets = [0, 128], sizes = [8, 64], strides = [1, 1]} : vector<8x256xf32> to vector<8x64xf32>
    %69 = vector.extract_strided_slice %64 {offsets = [0, 192], sizes = [8, 64], strides = [1, 1]} : vector<8x256xf32> to vector<8x64xf32>
    %70 = arith.mulf %67, %52 : vector<8x64xf32>
    %71 = arith.mulf %66, %68 : vector<8x64xf32>
    %72 = arith.addf %70, %71 : vector<8x64xf32>
    %73 = math.tanh %72 : vector<8x64xf32>
    %74 = arith.mulf %69, %73 : vector<8x64xf32>
    %c8_25 = arith.constant 8 : index
    %c0_26 = arith.constant 0 : index
    %75 = vector.load %arg8[%c8_25, %c0_26] : memref<64x64xf32, #tpu.memory_space<vmem>>, vector<8x64xf32>
    tpu.vector_store %arg8[%c8_25, %c0_26], %74 {strides = array<i32>} : memref<64x64xf32, #tpu.memory_space<vmem>>, vector<8x64xf32>,
    %c24 = arith.constant 24 : index
    %c0_27 = arith.constant 0 : index
    %76 = vector.load %arg7[%c24, %c0_27] : memref<72x256xf32, #tpu.memory_space<vmem>>, vector<8x256xf32>
    %77 = arith.truncf %74 : vector<8x64xf32> to vector<8x64xbf16>
    %cst_28 = arith.constant dense<0.000000e+00> : vector<8x256xf32>
    %78 = tpu.matmul %77, %9, %cst_28 {dimension_numbers = #tpu.dot_dimension_numbers<[1], [0], [0], [1], [0, 0, 1, 1], [], []>} : vector<8x64xbf16>, vector<64x256xbf16>, vector<8x256xf32> -> vector<8x256xf32>
    %79 = arith.addf %76, %78 : vector<8x256xf32>
    %80 = arith.negf %79 : vector<8x256xf32>
    %81 = math.exp %80 : vector<8x256xf32>
    %cst_29 = arith.constant 1.000000e+00 : f32
    %82 = vector.broadcast %cst_29 : f32 to vector<8x256xf32>
    %83 = arith.addf %82, %81 : vector<8x256xf32>
    %84 = arith.divf %82, %83 : vector<8x256xf32>
    %85 = math.tanh %79 : vector<8x256xf32>
    %86 = vector.extract_strided_slice %84 {offsets = [0, 0], sizes = [8, 64], strides = [1, 1]} : vector<8x256xf32> to vector<8x64xf32>
    %87 = vector.extract_strided_slice %84 {offsets = [0, 64], sizes = [8, 64], strides = [1, 1]} : vector<8x256xf32> to vector<8x64xf32>
    %88 = vector.extract_strided_slice %85 {offsets = [0, 128], sizes = [8, 64], strides = [1, 1]} : vector<8x256xf32> to vector<8x64xf32>
    %89 = vector.extract_strided_slice %84 {offsets = [0, 192], sizes = [8, 64], strides = [1, 1]} : vector<8x256xf32> to vector<8x64xf32>
    %90 = arith.mulf %87, %72 : vector<8x64xf32>
    %91 = arith.mulf %86, %88 : vector<8x64xf32>
    %92 = arith.addf %90, %91 : vector<8x64xf32>
    %93 = math.tanh %92 : vector<8x64xf32>
    %94 = arith.mulf %89, %93 : vector<8x64xf32>
    %c16_30 = arith.constant 16 : index
    %c0_31 = arith.constant 0 : index
    %95 = vector.load %arg8[%c16_30, %c0_31] : memref<64x64xf32, #tpu.memory_space<vmem>>, vector<8x64xf32>
    tpu.vector_store %arg8[%c16_30, %c0_31], %94 {strides = array<i32>} : memref<64x64xf32, #tpu.memory_space<vmem>>, vector<8x64xf32>,
    %c32 = arith.constant 32 : index
    %c0_32 = arith.constant 0 : index
    %96 = vector.load %arg7[%c32, %c0_32] : memref<72x256xf32, #tpu.memory_space<vmem>>, vector<8x256xf32>
    %97 = arith.truncf %94 : vector<8x64xf32> to vector<8x64xbf16>
    %cst_33 = arith.constant dense<0.000000e+00> : vector<8x256xf32>
    %98 = tpu.matmul %97, %9, %cst_33 {dimension_numbers = #tpu.dot_dimension_numbers<[1], [0], [0], [1], [0, 0, 1, 1], [], []>} : vector<8x64xbf16>, vector<64x256xbf16>, vector<8x256xf32> -> vector<8x256xf32>
    %99 = arith.addf %96, %98 : vector<8x256xf32>
    %100 = arith.negf %99 : vector<8x256xf32>
    %101 = math.exp %100 : vector<8x256xf32>
    %cst_34 = arith.constant 1.000000e+00 : f32
    %102 = vector.broadcast %cst_34 : f32 to vector<8x256xf32>
    %103 = arith.addf %102, %101 : vector<8x256xf32>
    %104 = arith.divf %102, %103 : vector<8x256xf32>
    %105 = math.tanh %99 : vector<8x256xf32>
    %106 = vector.extract_strided_slice %104 {offsets = [0, 0], sizes = [8, 64], strides = [1, 1]} : vector<8x256xf32> to vector<8x64xf32>
    %107 = vector.extract_strided_slice %104 {offsets = [0, 64], sizes = [8, 64], strides = [1, 1]} : vector<8x256xf32> to vector<8x64xf32>
    %108 = vector.extract_strided_slice %105 {offsets = [0, 128], sizes = [8, 64], strides = [1, 1]} : vector<8x256xf32> to vector<8x64xf32>
    %109 = vector.extract_strided_slice %104 {offsets = [0, 192], sizes = [8, 64], strides = [1, 1]} : vector<8x256xf32> to vector<8x64xf32>
    %110 = arith.mulf %107, %92 : vector<8x64xf32>
    %111 = arith.mulf %106, %108 : vector<8x64xf32>
    %112 = arith.addf %110, %111 : vector<8x64xf32>
    %113 = math.tanh %112 : vector<8x64xf32>
    %114 = arith.mulf %109, %113 : vector<8x64xf32>
    %c24_35 = arith.constant 24 : index
    %c0_36 = arith.constant 0 : index
    %115 = vector.load %arg8[%c24_35, %c0_36] : memref<64x64xf32, #tpu.memory_space<vmem>>, vector<8x64xf32>
    tpu.vector_store %arg8[%c24_35, %c0_36], %114 {strides = array<i32>} : memref<64x64xf32, #tpu.memory_space<vmem>>, vector<8x64xf32>,
    %c40 = arith.constant 40 : index
    %c0_37 = arith.constant 0 : index
    %116 = vector.load %arg7[%c40, %c0_37] : memref<72x256xf32, #tpu.memory_space<vmem>>, vector<8x256xf32>
    %117 = arith.truncf %114 : vector<8x64xf32> to vector<8x64xbf16>
    %cst_38 = arith.constant dense<0.000000e+00> : vector<8x256xf32>
    %118 = tpu.matmul %117, %9, %cst_38 {dimension_numbers = #tpu.dot_dimension_numbers<[1], [0], [0], [1], [0, 0, 1, 1], [], []>} : vector<8x64xbf16>, vector<64x256xbf16>, vector<8x256xf32> -> vector<8x256xf32>
    %119 = arith.addf %116, %118 : vector<8x256xf32>
    %120 = arith.negf %119 : vector<8x256xf32>
    %121 = math.exp %120 : vector<8x256xf32>
    %cst_39 = arith.constant 1.000000e+00 : f32
    %122 = vector.broadcast %cst_39 : f32 to vector<8x256xf32>
    %123 = arith.addf %122, %121 : vector<8x256xf32>
    %124 = arith.divf %122, %123 : vector<8x256xf32>
    %125 = math.tanh %119 : vector<8x256xf32>
    %126 = vector.extract_strided_slice %124 {offsets = [0, 0], sizes = [8, 64], strides = [1, 1]} : vector<8x256xf32> to vector<8x64xf32>
    %127 = vector.extract_strided_slice %124 {offsets = [0, 64], sizes = [8, 64], strides = [1, 1]} : vector<8x256xf32> to vector<8x64xf32>
    %128 = vector.extract_strided_slice %125 {offsets = [0, 128], sizes = [8, 64], strides = [1, 1]} : vector<8x256xf32> to vector<8x64xf32>
    %129 = vector.extract_strided_slice %124 {offsets = [0, 192], sizes = [8, 64], strides = [1, 1]} : vector<8x256xf32> to vector<8x64xf32>
    %130 = arith.mulf %127, %112 : vector<8x64xf32>
    %131 = arith.mulf %126, %128 : vector<8x64xf32>
    %132 = arith.addf %130, %131 : vector<8x64xf32>
    %133 = math.tanh %132 : vector<8x64xf32>
    %134 = arith.mulf %129, %133 : vector<8x64xf32>
    %c32_40 = arith.constant 32 : index
    %c0_41 = arith.constant 0 : index
    %135 = vector.load %arg8[%c32_40, %c0_41] : memref<64x64xf32, #tpu.memory_space<vmem>>, vector<8x64xf32>
    tpu.vector_store %arg8[%c32_40, %c0_41], %134 {strides = array<i32>} : memref<64x64xf32, #tpu.memory_space<vmem>>, vector<8x64xf32>,
    %c48 = arith.constant 48 : index
    %c0_42 = arith.constant 0 : index
    %136 = vector.load %arg7[%c48, %c0_42] : memref<72x256xf32, #tpu.memory_space<vmem>>, vector<8x256xf32>
    %137 = arith.truncf %134 : vector<8x64xf32> to vector<8x64xbf16>
    %cst_43 = arith.constant dense<0.000000e+00> : vector<8x256xf32>
    %138 = tpu.matmul %137, %9, %cst_43 {dimension_numbers = #tpu.dot_dimension_numbers<[1], [0], [0], [1], [0, 0, 1, 1], [], []>} : vector<8x64xbf16>, vector<64x256xbf16>, vector<8x256xf32> -> vector<8x256xf32>
    %139 = arith.addf %136, %138 : vector<8x256xf32>
    %140 = arith.negf %139 : vector<8x256xf32>
    %141 = math.exp %140 : vector<8x256xf32>
    %cst_44 = arith.constant 1.000000e+00 : f32
    %142 = vector.broadcast %cst_44 : f32 to vector<8x256xf32>
    %143 = arith.addf %142, %141 : vector<8x256xf32>
    %144 = arith.divf %142, %143 : vector<8x256xf32>
    %145 = math.tanh %139 : vector<8x256xf32>
    %146 = vector.extract_strided_slice %144 {offsets = [0, 0], sizes = [8, 64], strides = [1, 1]} : vector<8x256xf32> to vector<8x64xf32>
    %147 = vector.extract_strided_slice %144 {offsets = [0, 64], sizes = [8, 64], strides = [1, 1]} : vector<8x256xf32> to vector<8x64xf32>
    %148 = vector.extract_strided_slice %145 {offsets = [0, 128], sizes = [8, 64], strides = [1, 1]} : vector<8x256xf32> to vector<8x64xf32>
    %149 = vector.extract_strided_slice %144 {offsets = [0, 192], sizes = [8, 64], strides = [1, 1]} : vector<8x256xf32> to vector<8x64xf32>
    %150 = arith.mulf %147, %132 : vector<8x64xf32>
    %151 = arith.mulf %146, %148 : vector<8x64xf32>
    %152 = arith.addf %150, %151 : vector<8x64xf32>
    %153 = math.tanh %152 : vector<8x64xf32>
    %154 = arith.mulf %149, %153 : vector<8x64xf32>
    %c40_45 = arith.constant 40 : index
    %c0_46 = arith.constant 0 : index
    %155 = vector.load %arg8[%c40_45, %c0_46] : memref<64x64xf32, #tpu.memory_space<vmem>>, vector<8x64xf32>
    tpu.vector_store %arg8[%c40_45, %c0_46], %154 {strides = array<i32>} : memref<64x64xf32, #tpu.memory_space<vmem>>, vector<8x64xf32>,
    %c56 = arith.constant 56 : index
    %c0_47 = arith.constant 0 : index
    %156 = vector.load %arg7[%c56, %c0_47] : memref<72x256xf32, #tpu.memory_space<vmem>>, vector<8x256xf32>
    %157 = arith.truncf %154 : vector<8x64xf32> to vector<8x64xbf16>
    %cst_48 = arith.constant dense<0.000000e+00> : vector<8x256xf32>
    %158 = tpu.matmul %157, %9, %cst_48 {dimension_numbers = #tpu.dot_dimension_numbers<[1], [0], [0], [1], [0, 0, 1, 1], [], []>} : vector<8x64xbf16>, vector<64x256xbf16>, vector<8x256xf32> -> vector<8x256xf32>
    %159 = arith.addf %156, %158 : vector<8x256xf32>
    %160 = arith.negf %159 : vector<8x256xf32>
    %161 = math.exp %160 : vector<8x256xf32>
    %cst_49 = arith.constant 1.000000e+00 : f32
    %162 = vector.broadcast %cst_49 : f32 to vector<8x256xf32>
    %163 = arith.addf %162, %161 : vector<8x256xf32>
    %164 = arith.divf %162, %163 : vector<8x256xf32>
    %165 = math.tanh %159 : vector<8x256xf32>
    %166 = vector.extract_strided_slice %164 {offsets = [0, 0], sizes = [8, 64], strides = [1, 1]} : vector<8x256xf32> to vector<8x64xf32>
    %167 = vector.extract_strided_slice %164 {offsets = [0, 64], sizes = [8, 64], strides = [1, 1]} : vector<8x256xf32> to vector<8x64xf32>
    %168 = vector.extract_strided_slice %165 {offsets = [0, 128], sizes = [8, 64], strides = [1, 1]} : vector<8x256xf32> to vector<8x64xf32>
    %169 = vector.extract_strided_slice %164 {offsets = [0, 192], sizes = [8, 64], strides = [1, 1]} : vector<8x256xf32> to vector<8x64xf32>
    %170 = arith.mulf %167, %152 : vector<8x64xf32>
    %171 = arith.mulf %166, %168 : vector<8x64xf32>
    %172 = arith.addf %170, %171 : vector<8x64xf32>
    %173 = math.tanh %172 : vector<8x64xf32>
    %174 = arith.mulf %169, %173 : vector<8x64xf32>
    %c48_50 = arith.constant 48 : index
    %c0_51 = arith.constant 0 : index
    %175 = vector.load %arg8[%c48_50, %c0_51] : memref<64x64xf32, #tpu.memory_space<vmem>>, vector<8x64xf32>
    tpu.vector_store %arg8[%c48_50, %c0_51], %174 {strides = array<i32>} : memref<64x64xf32, #tpu.memory_space<vmem>>, vector<8x64xf32>,
    %c64_52 = arith.constant 64 : index
    %c0_53 = arith.constant 0 : index
    %176 = vector.load %arg7[%c64_52, %c0_53] : memref<72x256xf32, #tpu.memory_space<vmem>>, vector<8x256xf32>
    %177 = arith.truncf %174 : vector<8x64xf32> to vector<8x64xbf16>
    %cst_54 = arith.constant dense<0.000000e+00> : vector<8x256xf32>
    %178 = tpu.matmul %177, %9, %cst_54 {dimension_numbers = #tpu.dot_dimension_numbers<[1], [0], [0], [1], [0, 0, 1, 1], [], []>} : vector<8x64xbf16>, vector<64x256xbf16>, vector<8x256xf32> -> vector<8x256xf32>
    %179 = arith.addf %176, %178 : vector<8x256xf32>
    %180 = arith.negf %179 : vector<8x256xf32>
    %181 = math.exp %180 : vector<8x256xf32>
    %cst_55 = arith.constant 1.000000e+00 : f32
    %182 = vector.broadcast %cst_55 : f32 to vector<8x256xf32>
    %183 = arith.addf %182, %181 : vector<8x256xf32>
    %184 = arith.divf %182, %183 : vector<8x256xf32>
    %185 = math.tanh %179 : vector<8x256xf32>
    %186 = vector.extract_strided_slice %184 {offsets = [0, 0], sizes = [8, 64], strides = [1, 1]} : vector<8x256xf32> to vector<8x64xf32>
    %187 = vector.extract_strided_slice %184 {offsets = [0, 64], sizes = [8, 64], strides = [1, 1]} : vector<8x256xf32> to vector<8x64xf32>
    %188 = vector.extract_strided_slice %185 {offsets = [0, 128], sizes = [8, 64], strides = [1, 1]} : vector<8x256xf32> to vector<8x64xf32>
    %189 = vector.extract_strided_slice %184 {offsets = [0, 192], sizes = [8, 64], strides = [1, 1]} : vector<8x256xf32> to vector<8x64xf32>
    %190 = arith.mulf %187, %172 : vector<8x64xf32>
    %191 = arith.mulf %186, %188 : vector<8x64xf32>
    %192 = arith.addf %190, %191 : vector<8x64xf32>
    %193 = math.tanh %192 : vector<8x64xf32>
    %194 = arith.mulf %189, %193 : vector<8x64xf32>
    %195 = arith.select %14, %192, %172 : vector<8x64xi1>, vector<8x64xf32>
    %196 = arith.select %14, %194, %174 : vector<8x64xi1>, vector<8x64xf32>
    %c56_56 = arith.constant 56 : index
    %c0_57 = arith.constant 0 : index
    %197 = vector.load %arg8[%c56_56, %c0_57] : memref<64x64xf32, #tpu.memory_space<vmem>>, vector<8x64xf32>
    tpu.vector_store %arg8[%c56_56, %c0_57], %196 {strides = array<i32>} : memref<64x64xf32, #tpu.memory_space<vmem>>, vector<8x64xf32>,
    %c0_58 = arith.constant 0 : index
    %c256 = arith.constant 256 : index
    %198 = vector.load %arg4[%c0_58, %c256] : memref<64x384xbf16, #tpu.memory_space<vmem>>, vector<64x128xbf16>
    %c0_59 = arith.constant 0 : index
    %c256_60 = arith.constant 256 : index
    %199 = vector.load %arg5[%c0_59, %c256_60] : memref<1x384xf32, #tpu.memory_space<vmem>>, vector<1x128xf32>
    %c0_61 = arith.constant 0 : index
    %c0_62 = arith.constant 0 : index
    %200 = vector.load %arg8[%c0_61, %c0_62] : memref<64x64xf32, #tpu.memory_space<vmem>>, vector<64x64xf32>
    %201 = arith.truncf %200 : vector<64x64xf32> to vector<64x64xbf16>
    %cst_63 = arith.constant dense<0.000000e+00> : vector<64x128xf32>
    %202 = tpu.matmul %201, %198, %cst_63 {dimension_numbers = #tpu.dot_dimension_numbers<[1], [0], [0], [1], [0, 0, 1, 1], [], []>} : vector<64x64xbf16>, vector<64x128xbf16>, vector<64x128xf32> -> vector<64x128xf32>
    %203 = vector.broadcast %199 : vector<1x128xf32> to vector<64x128xf32>
    %204 = arith.addf %202, %203 : vector<64x128xf32>
    %c0_64 = arith.constant 0 : index
    %c0_65 = arith.constant 0 : index
    %205 = vector.load %arg6[%c0_64, %c0_65] : memref<72x128xf32, #tpu.memory_space<vmem>>, vector<64x128xf32>
    tpu.vector_store %arg6[%c0_64, %c0_65], %204 {strides = array<i32>} : memref<72x128xf32, #tpu.memory_space<vmem>>, vector<64x128xf32>,
    %206 = tpu.concatenate %196, %195 in 1 : vector<8x64xf32>, vector<8x64xf32> -> vector<8x128xf32>
    %c64_66 = arith.constant 64 : index
    %c0_67 = arith.constant 0 : index
    %207 = vector.load %arg6[%c64_66, %c0_67] : memref<72x128xf32, #tpu.memory_space<vmem>>, vector<8x128xf32>
    tpu.vector_store %arg6[%c64_66, %c0_67], %206 {strides = array<i32>} : memref<72x128xf32, #tpu.memory_space<vmem>>, vector<8x128xf32>,
    return
  }
  func.func @transform_0(%arg0: i32) -> (i32, i32) {
    %c0_i32 = arith.constant 0 : i32
    %c0_i32_0 = arith.constant 0 : i32
    %c0_i32_1 = arith.constant 0 : i32
    return %c0_i32, %c0_i32_0 : i32, i32
  }
  func.func @transform_1(%arg0: i32) -> (i32, i32) {
    %c0_i32 = arith.constant 0 : i32
    %c0_i32_0 = arith.constant 0 : i32
    %c0_i32_1 = arith.constant 0 : i32
    return %c0_i32, %c0_i32_0 : i32, i32
  }
  func.func @transform_2(%arg0: i32) -> (i32, i32) {
    %c0_i32 = arith.constant 0 : i32
    %c0_i32_0 = arith.constant 0 : i32
    %c0_i32_1 = arith.constant 0 : i32
    return %c0_i32, %c0_i32_0 : i32, i32
  }
  func.func @transform_3(%arg0: i32) -> (i32, i32) {
    %c0_i32 = arith.constant 0 : i32
    %c0_i32_0 = arith.constant 0 : i32
    %c0_i32_1 = arith.constant 0 : i32
    return %c0_i32, %c0_i32_0 : i32, i32
  }
  func.func @transform_4(%arg0: i32) -> (i32, i32) {
    %c0_i32 = arith.constant 0 : i32
    %c0_i32_0 = arith.constant 0 : i32
    %c0_i32_1 = arith.constant 0 : i32
    return %c0_i32, %c0_i32_0 : i32, i32
  }
  func.func @transform_5(%arg0: i32) -> (i32, i32) {
    %c0_i32 = arith.constant 0 : i32
    %c0_i32_0 = arith.constant 0 : i32
    %c0_i32_1 = arith.constant 0 : i32
    return %c0_i32, %c0_i32_0 : i32, i32
  }
}

</mosaic_0001>

<bundles_post_ra>
// kernel: tpu_custom_call.1
= control target key start
LH: loop header
LB: loop body
LE: loop exit
PB: predicated region body
PF: predicated region fallthrough
CT: control target
= control target key end

     0   :  { %10 = vsyncpa [#allocation5], 0  ;;  %s1754_s0 = inlined_call_operand.vmem [shape: bf16[72,16], index: 0, kind: input, shape index: {}]   ;;  %s1755_s1 = inlined_call_operand.vmem [shape: f32[8,128], index: 1, kind: input, shape index: {}]   ;;  %s1756_s2 = inlined_call_operand.vmem [shape: bf16[16,256], index: 2, kind: input, shape index: {}]   ;;  %s1757_s3 = inlined_call_operand.hbm [shape: bf16[64,384], index: 3, kind: input, shape index: {}]   ;;  %s1758_s4 = inlined_call_operand.vmem [shape: f32[1,384], index: 4, kind: input, shape index: {}]   ;;  %s1759_s5 = inlined_call_operand.hbm [shape: f32[72,128], index: 5, kind: output, shape index: {}]  }
   0x1   :  { %11 = vsyncpa [#allocation6], 0  ;;  %s1412_s18 = smov [#allocation4]  }
   0x2   :  { %s23_s19 = sshll.u32 %s1412_s18, 4  ;;  %s24_s19 = int_to_ptr.vmem [resolvable:$true] %s23_s19 }
   0x3   :  { %s1376_s20 = scalar_lea.vmem %s24_s19, 1536  ;;  %p1381_p1 = scmp.lt.s32.totalorder %s24_s19, %s24_s19 }
   0x4   :  { %p1377_p0 = scmp.ne.s32.totalorder %s24_s19, %s1376_s20  ;;  %p1382_p2 = scmp.lt.s32.totalorder %s1376_s20, %s1376_s20 }
   0x6   :  { %p1383_p3 = por %p1382_p2, %p1381_p1 }
   0x8   :  { %p1384_p4 = pnand %p1383_p3, %p1377_p0 }
   0xa   :  { %1387 = shalt.err (!%p1384_p4)
}
   0xb   :  { %s1413_s21 = smov 192   ;;  %s1414_s22 = smov 12  }
   0xc   :  { %29 = dma.hbm_to_vmem [thread:$0]  %s1757_s3, 1536, %s24_s19, [#allocation5], %s1413_s21, %s1413_s21, %s1414_s22  }
   0xd   :  { %1408 = dma.done.wait [#allocation5], 1536  }
   0xe   :  { %1409 = vsyncadd [#allocation5], 4294965760  ;;  %v1415_v0 = vmov 0   ;;  %v1455_v1 = vld [vmem:[#allocation4 + $0x4c] ss:$12 sps:$4 sm:$0xff]   ;;  %v1245_v7 = vld [vmem:[%s1754_s0] sm:$0xff]   ;;  %v49_v14 = vlaneseq }
   0xf   :  { %140 = vmatprep.mubr.bf16.mxu0 %v1415_v0  ;;  %299 = vmatprep.mubr.bf16.mxu1 %v1415_v0  ;;  %v1457_v2 = vld [vmem:[#allocation4 + $0x48] ss:$12 sps:$4 sm:$0xff]   ;;  %v1239_v3 = vld [vmem:[%s1756_s2 + $0x4] ss:$8 sps:$4 sm:$0xff]   ;;  %v1469_v6 = vld [vmem:[#allocation4 + $0x30] ss:$12 sps:$4 sm:$0xff]  }
  0x10   :  { %275 = vmatprep.subr.bf16.mxu1 %v1455_v1  ;;  %v1464_v4 = vld [vmem:[#allocation4 + $0x34] ss:$12 sps:$4 sm:$0xff]   ;;  %122 = vmatprep.subr.bf16.mxu0 %v1239_v3  ;;  %vm92_vm0 = vcmask 130048   ;;  %v1475_v8 = vld [vmem:[#allocation4 + $0x1c] ss:$12 sps:$4 sm:$0xff]   ;;  %vm263_vm1 = vcmask 523264  }
  0x11   :  { %276 = vmatpush1.bf16.msra.mxu1 %v1457_v2  ;;  %v1243_v5 = vld [vmem:[%s1756_s2] ss:$8 sps:$4 sm:$0xff]   ;;  %v1479_v9 = vld [vmem:[#allocation4 + $0x18] ss:$12 sps:$4 sm:$0xff]   ;;  %v50_v15 = vshrl.u32 %v49_v14, 7  ;;  %s1416_s7 = smov 64  }
  0x12   :  { %277 = vmatprep.subr.bf16.mxu1 %v1464_v4  ;;  %123 = vmatpush1.bf16.msra.mxu0 %v1243_v5  ;;  %v1483_v10 = vld [vmem:[#allocation4 + $0x4] ss:$12 sps:$4 sm:$0xff]   ;;  %v1485_v11 = vld [vmem:[#allocation4] ss:$12 sps:$4 sm:$0xff]   ;;  %v1532_v46 = vand.u32 127, %v49_v14 }
  0x13   :  { %443 = vmatprep.subr.bf16.mxu0 %v1455_v1  ;;  %v1490_v12 = vld [vmem:[%s1755_s1] sm:$0xff]  ;;  %v51_v16 = vsub.s32 0, %v50_v15  ;;  %v55_v26 = vsub.s32 1, %v50_v15  ;;  %v1252_v14 = vld [vmem:[%s1754_s0 + $0x8] sm:$0xff]   ;;  %v1253_v15 = vld [vmem:[%s1754_s0 + $0x10] sm:$0xff]  }
  0x14   :  { %v222_v13 = vpack.c.bf16 %v1490_v12, %v1490_v12  ;;  %v47_v17 = vld [vmem:[%s1758_s4] sm:$0x3]  ;;  %vm218_vm2 = vcmp.lt.s32.totalorder %v1532_v46, 32  ;;  %vm219_vm3 = vcmp.ge.s32.totalorder %v1532_v46, 32 }
  0x15   :  { %278 = vmatpush1.bf16.msra.mxu1 %v1469_v6  ;;  %1155 = vmatmul.mubr.msk.bf16.vlgmr.msra.gmra.mxu0 %vm92_vm0, %v1245_v7  ;;  %v1520_v18 = vrot.slane %v47_v17, %v51_v16  ;;  %v1523_v28 = vrot.slane %v47_v17, %v55_v26  ;;  %v1254_v16 = vld [vmem:[%s1754_s0 + $0x18] sm:$0xff]   ;;  %v1255_v17 = vld [vmem:[%s1754_s0 + $0x20] ss:$0 sps:$4 sm:$0xff]  }
  0x16   :  { %279 = vmatprep.subr.bf16.mxu1 %v1475_v8  ;;  %444 = vmatpush1.bf16.msra.mxu0 %v1457_v2 }
  0x17   :  { %150 = vmatprep.mubr.bf16.mxu0 %v1415_v0  ;;  %445 = vmatprep.subr.bf16.mxu0 %v1464_v4 }
  0x19   :  { %280 = vmatpush1.bf16.msra.mxu1 %v1479_v9 }
  0x1a   :  { %281 = vmatprep.subr.bf16.mxu1 %v1483_v10  ;;  %446 = vmatpush1.bf16.msra.mxu0 %v1469_v6 }
  0x1b   :  { %447 = vmatprep.subr.bf16.mxu0 %v1475_v8 }
  0x1d   :  { %282 = vmatpush1.bf16.msra.mxu1 %v1485_v11  ;;  %1156 = vmatmul.mubr.msk.bf16.gmra.mxu0 %vm92_vm0, %v1252_v14 }
  0x1e   :  { %360 = vmatprep.subr.bf16.mxu1 %v1455_v1  ;;  %448 = vmatpush1.bf16.msra.mxu0 %v1479_v9 }
  0x1f   :  { %449 = vmatprep.subr.bf16.mxu0 %v1483_v10  ;;  %160 = vmatprep.mubr.bf16.mxu0 %v1415_v0 }
  0x20   :  { %1168 = vmatmul.mubr.msk.bf16.vlgmr.msra.gmra.mxu1 %vm263_vm1, %v222_v13 }
  0x21   :  { %361 = vmatpush1.bf16.msra.mxu1 %v1457_v2  ;;  %384 = vmatprep.mubr.bf16.mxu1 %v1415_v0 }
  0x22   :  { %362 = vmatprep.subr.bf16.mxu1 %v1464_v4  ;;  %450 = vmatpush1.bf16.msra.mxu0 %v1485_v11 }
  0x23   :  { %601 = vmatprep.subr.bf16.mxu0 %v1455_v1 }
  0x25   :  { %363 = vmatpush1.bf16.msra.mxu1 %v1469_v6  ;;  %1157 = vmatmul.mubr.msk.bf16.gmra.mxu0 %vm92_vm0, %v1253_v15 }
  0x26   :  { %364 = vmatprep.subr.bf16.mxu1 %v1475_v8  ;;  %170 = vmatprep.mubr.bf16.mxu0 %v1415_v0 }
  0x29   :  { %365 = vmatpush1.bf16.msra.mxu1 %v1479_v9 }
  0x2a   :  { %366 = vmatprep.subr.bf16.mxu1 %v1483_v10 }
  0x2d   :  { %367 = vmatpush1.bf16.msra.mxu1 %v1485_v11  ;;  %1158 = vmatmul.mubr.msk.bf16.gmra.mxu0 %vm92_vm0, %v1254_v16 }
  0x2e   :  { %522 = vmatprep.subr.bf16.mxu1 %v1455_v1  ;;  %180 = vmatprep.mubr.bf16.mxu0 %v1415_v0 }
  0x35   :  { %1159 = vmatmul.mubr.msk.bf16.gmra.mxu0 %vm92_vm0, %v1255_v17 }
  0x36   :  { %467 = vmatprep.mubr.bf16.mxu0 %v1415_v0 }
  0xd5   :  { %v142_v19 = vpop.f32.mrf.mxu0 }
  0xd6   :  { %v143_v20 = vadd.f32 %v142_v19, %v1520_v18 }
  0xd7   :  { %v144_v29 = vpop.f32.mrf.mxu0 }
  0xd8   :  { %v145_v30 = vadd.f32 %v144_v29, %v1523_v28 }
  0xd9   :  { %v146_v53 = vpop.f32.mrf.mxu0 }
  0xda   :  { %v147_v54 = vadd.f32 %v146_v53, %v1520_v18 }
  0xdb   :  { %v148_v61 = vpop.f32.mrf.mxu0 }
  0xdc   :  { %v149_v62 = vadd.f32 %v148_v61, %v1523_v28 }
  0xe0   :  { %v301_v21 = vpop.f32.mrf.mxu1 }
  0xe1   :  { %v308_v22 = vadd.f32 %v301_v21, %v143_v20 }
  0xe2   :  { %v303_v23 = vpop.f32.mrf.mxu1 }
  0xe3   :  { %v1169_v24 = vmul.f32 -1.442695, %v308_v22  ;;  %v309_v31 = vadd.f32 %v303_v23, %v145_v30 }
  0xe4   :  { %v305_v25 = vpop.f32.mrf.mxu1 }
  0xe5   :  { %1260 = vpow2.f32 %v1169_v24  ;;  %v1170_v37 = vmul.f32 -1.442695, %v309_v31 }
  0xe6   :  { %v306_v27 = vpop.f32.mrf.mxu1  ;;  %1262 = vtanh.f32 %v309_v31  ;;  %v152_v31 = vpop.f32.mrf.mxu0 }
  0xf2   :  { %v1261_v32 = vpop.eup %1260 }
  0xf3   :  { %v316_v33 = vadd.f32 1.0, %v1261_v32  ;;  %v1263_v34 = vpop.eup %1262  ;;  %v154_v32 = vpop.f32.mrf.mxu0 }
  0xf5   :  { %1264 = vrcp.f32 %v316_v33  ;;  %v1575_v33 = vpop.f32.mrf.mxu0 }
  0xf6   :  { %1266 = vpow2.f32 %v1170_v37 }
 0x102   :  { %v1265_v35 = vpop.eup %1264 }
 0x103   :  { %v324_v36 = vmul.f32 %v1265_v35, %v1263_v34  ;;  %v1267_v38 = vpop.eup %1266  ;;  %v323_v40 = vmul.f32 %v1265_v35, %v1490_v12  ;;  %v1577_v34 = vpop.f32.mrf.mxu0 }
 0x104   :  { %v317_v39 = vadd.f32 1.0, %v1267_v38 }
 0x105   :  { %326 = vrot.lane.b32.xlu0 %v324_v36, %s1416_s7  ;;  %v1579_v35 = vpop.f32.mrf.mxu0 }
 0x106   :  { %1268 = vrcp.f32 %v317_v39 }
 0x107   :  { %v1581_v36 = vpop.f32.mrf.mxu0 }
 0x109   :  { %v1583_v37 = vpop.f32.mrf.mxu0 }
 0x10b   :  { %v1585_v38 = vpop.f32.mrf.mxu0 }
 0x10d   :  { %v1587_v39 = vpop.f32.mrf.mxu0 }
 0x113   :  { %v1269_v43 = vpop.eup %1268 }
 0x177   :  { %v327_v41 = vpop.permute.xlu0 %326 }
 0x178   :  { %v329_v42 = vadd.f32 %v327_v41, %v323_v40  ;;  %v1589_v40 = vpop.f32.mrf.mxu0 }
 0x17a   :  { %1270 = vtanh.f32 %v329_v42  ;;  %333 = vrot.lane.b32.xlu1 %v329_v42, %s1416_s7  ;;  %v1591_v41 = vpop.f32.mrf.mxu0 }
 0x17c   :  { %v1593_v42 = vpop.f32.mrf.mxu0 }
 0x17e   :  { %337 = vrot.lane.b32.xlu1 %v1490_v12, %s1416_s7 }
 0x187   :  { %v1271_v44 = vpop.eup %1270 }
 0x188   :  { %v331_v45 = vmul.f32 %v1271_v44, %v1269_v43  ;;  %v1595_v43 = vpop.f32.mrf.mxu0 }
 0x18a   :  { %342 = vrot.lane.b32.xlu0 %v331_v45, %s1416_s7  ;;  %v1597_v44 = vpop.f32.mrf.mxu0 }
 0x18c   :  { %v186_v45 = vpop.f32.mrf.mxu0 }
 0x1ec   :  { %v334_v47 = vpop.permute.xlu1 %333 }
 0x1f0   :  { %v338_v48 = vpop.permute.xlu1 %337 }
 0x1f1   :  { %v340_v49 = vsel %vm218_vm2, %v334_v47, %v338_v48  ;;  %v187_v47 = vpop.f32.mrf.mxu0 }
 0x1f2   :  { %409 = vrot.lane.b32.xlu0 %v340_v49, %s1416_s7  ;;  %v153_v49 = vadd.f32 %v152_v31, %v1520_v18 }
 0x1fc   :  { %v343_v50 = vpop.permute.xlu0 %342 }
 0x1fd   :  { %v345_v51 = vsel %vm218_vm2, %v343_v50, %v1490_v12 }
 0x1fe   :  { %v348_v52 = vpack.c.bf16 %v345_v51, %v345_v51 }
 0x200   :  { %1171 = vmatmul.mubr.msk.bf16.vlgmr.msra.gmra.mxu1 %vm263_vm1, %v348_v52 }
 0x201   :  { %523 = vmatpush1.bf16.msra.mxu1 %v1457_v2  ;;  %546 = vmatprep.mubr.bf16.mxu1 %v1415_v0 }
 0x202   :  { %524 = vmatprep.subr.bf16.mxu1 %v1464_v4 }
 0x205   :  { %525 = vmatpush1.bf16.msra.mxu1 %v1469_v6 }
 0x206   :  { %526 = vmatprep.subr.bf16.mxu1 %v1475_v8 }
 0x209   :  { %527 = vmatpush1.bf16.msra.mxu1 %v1479_v9 }
 0x20a   :  { %528 = vmatprep.subr.bf16.mxu1 %v1483_v10 }
 0x20d   :  { %529 = vmatpush1.bf16.msra.mxu1 %v1485_v11 }
 0x20e   :  { %680 = vmatprep.subr.bf16.mxu1 %v1455_v1 }
 0x264   :  { %v410_v21 = vpop.permute.xlu0 %409 }
 0x2c0   :  { %v386_v55 = vpop.f32.mrf.mxu1 }
 0x2c1   :  { %v393_v56 = vadd.f32 %v386_v55, %v147_v54 }
 0x2c2   :  { %v388_v57 = vpop.f32.mrf.mxu1 }
 0x2c3   :  { %v1172_v58 = vmul.f32 -1.442695, %v393_v56  ;;  %v394_v63 = vadd.f32 %v388_v57, %v149_v62  ;;  %v155_v56 = vadd.f32 %v154_v32, %v1523_v28 }
 0x2c4   :  { %v390_v59 = vpop.f32.mrf.mxu1 }
 0x2c5   :  { %1272 = vpow2.f32 %v1172_v58  ;;  %v1173_v19 = vmul.f32 -1.442695, %v394_v63 }
 0x2c6   :  { %v391_v60 = vpop.f32.mrf.mxu1  ;;  %1274 = vtanh.f32 %v394_v63 }
 0x2d2   :  { %v1273_v3 = vpop.eup %1272 }
 0x2d3   :  { %v401_v5 = vadd.f32 1.0, %v1273_v3  ;;  %v1275_v7 = vpop.eup %1274 }
 0x2d5   :  { %1276 = vrcp.f32 %v401_v5 }
 0x2d6   :  { %1278 = vpow2.f32 %v1173_v19 }
 0x2e2   :  { %v1277_v12 = vpop.eup %1276 }
 0x2e3   :  { %v413_v13 = vmul.f32 %v1277_v12, %v1275_v7  ;;  %v1279_v20 = vpop.eup %1278  ;;  %v412_v23 = vmul.f32 %v1277_v12, %v410_v21 }
 0x2e4   :  { %v402_v22 = vadd.f32 1.0, %v1279_v20  ;;  %v157_v20 = vadd.f32 %v1575_v33, %v1520_v18 }
 0x2e5   :  { %415 = vrot.lane.b32.xlu1 %v413_v13, %s1416_s7 }
 0x2e6   :  { %1280 = vrcp.f32 %v402_v22 }
 0x2f3   :  { %v1281_v26 = vpop.eup %1280 }
 0x357   :  { %v416_v24 = vpop.permute.xlu1 %415 }
 0x358   :  { %v418_v25 = vadd.f32 %v416_v24, %v412_v23 }
 0x35a   :  { %1282 = vtanh.f32 %v418_v25 }
 0x367   :  { %v1283_v27 = vpop.eup %1282 }
 0x368   :  { %v1570_v29 = vmul.f32 %v1283_v27, %v1281_v26  ;;  %v159_v27 = vadd.f32 %v1577_v34, %v1523_v28 }
 0x36a   :  { %v428_v30 = vpack.c.bf16 %v1570_v29, %v1570_v29 }
 0x36c   :  { %430 = vrot.lane.b32.xlu0 %v428_v30, %s1416_s7 }
 0x3de   :  { %v431_v48 = vpop.permute.xlu0 %430 }
 0x3df   :  { %1174 = vmatmul.mubr.msk.bf16.vlgmr.msra.gmra.mxu0 %vm263_vm1, %v431_v48 }
 0x3e0   :  { %602 = vmatpush1.bf16.msra.mxu0 %v1457_v2  ;;  %625 = vmatprep.mubr.bf16.mxu0 %v1415_v0 }
 0x3e1   :  { %603 = vmatprep.subr.bf16.mxu0 %v1464_v4 }
 0x3e4   :  { %604 = vmatpush1.bf16.msra.mxu0 %v1469_v6 }
 0x3e5   :  { %605 = vmatprep.subr.bf16.mxu0 %v1475_v8 }
 0x3e8   :  { %606 = vmatpush1.bf16.msra.mxu0 %v1479_v9 }
 0x3e9   :  { %607 = vmatprep.subr.bf16.mxu0 %v1483_v10 }
 0x3ec   :  { %608 = vmatpush1.bf16.msra.mxu0 %v1485_v11 }
 0x3ed   :  { %759 = vmatprep.subr.bf16.mxu0 %v1455_v1 }
 0x49f   :  { %v469_v50 = vpop.f32.mrf.mxu0 }
 0x4a0   :  { %v476_v51 = vadd.f32 %v469_v50, %v153_v49 }
 0x4a1   :  { %v471_v52 = vpop.f32.mrf.mxu0 }
 0x4a2   :  { %v1175_v53 = vmul.f32 -1.442695, %v476_v51  ;;  %v477_v57 = vadd.f32 %v471_v52, %v155_v56 }
 0x4a3   :  { %v473_v54 = vpop.f32.mrf.mxu0 }
 0x4a4   :  { %1284 = vpow2.f32 %v1175_v53  ;;  %v1176_v63 = vmul.f32 -1.442695, %v477_v57 }
 0x4a5   :  { %v474_v55 = vpop.f32.mrf.mxu0  ;;  %1286 = vtanh.f32 %v477_v57 }
 0x4b1   :  { %v1285_v58 = vpop.eup %1284 }
 0x4b2   :  { %v484_v59 = vadd.f32 1.0, %v1285_v58  ;;  %v1287_v60 = vpop.eup %1286  ;;  %v163_v58 = vadd.f32 %v1579_v35, %v1520_v18 }
 0x4b4   :  { %1288 = vrcp.f32 %v484_v59 }
 0x4b5   :  { %1290 = vpow2.f32 %v1176_v63 }
 0x4c1   :  { %v1289_v61 = vpop.eup %1288 }
 0x4c2   :  { %v492_v62 = vmul.f32 %v1289_v61, %v1287_v60  ;;  %v1291_v3 = vpop.eup %1290  ;;  %v491_v7 = vmul.f32 %v1289_v61, %v418_v25 }
 0x4c3   :  { %v485_v5 = vadd.f32 1.0, %v1291_v3 }
 0x4c4   :  { %494 = vrot.lane.b32.xlu1 %v492_v62, %s1416_s7 }
 0x4c5   :  { %1292 = vrcp.f32 %v485_v5  ;;  %v165_v5 = vadd.f32 %v1581_v36, %v1523_v28 }
 0x4d2   :  { %v1293_v14 = vpop.eup %1292 }
 0x536   :  { %v495_v12 = vpop.permute.xlu1 %494 }
 0x537   :  { %v497_v13 = vadd.f32 %v495_v12, %v491_v7 }
 0x539   :  { %1294 = vtanh.f32 %v497_v13 }
 0x546   :  { %v1295_v15 = vpop.eup %1294 }
 0x547   :  { %v1612_v16 = vmul.f32 %v1295_v15, %v1293_v14 }
 0x549   :  { %v507_v17 = vpack.c.bf16 %v1612_v16, %v1612_v16 }
 0x54b   :  { %509 = vrot.lane.b32.xlu0 %v507_v17, %s1416_s7 }
 0x5bd   :  { %v510_v19 = vpop.permute.xlu0 %509 }
 0x5be   :  { %1177 = vmatmul.mubr.msk.bf16.vlgmr.msra.gmra.mxu1 %vm263_vm1, %v510_v19 }
 0x5bf   :  { %681 = vmatpush1.bf16.msra.mxu1 %v1457_v2  ;;  %704 = vmatprep.mubr.bf16.mxu1 %v1415_v0 }
 0x5c0   :  { %682 = vmatprep.subr.bf16.mxu1 %v1464_v4 }
 0x5c3   :  { %683 = vmatpush1.bf16.msra.mxu1 %v1469_v6 }
 0x5c4   :  { %684 = vmatprep.subr.bf16.mxu1 %v1475_v8 }
 0x5c7   :  { %685 = vmatpush1.bf16.msra.mxu1 %v1479_v9 }
 0x5c8   :  { %686 = vmatprep.subr.bf16.mxu1 %v1483_v10 }
 0x5cb   :  { %687 = vmatpush1.bf16.msra.mxu1 %v1485_v11 }
 0x5cc   :  { %838 = vmatprep.subr.bf16.mxu1 %v1455_v1 }
 0x67e   :  { %v548_v21 = vpop.f32.mrf.mxu1 }
 0x67f   :  { %v555_v22 = vadd.f32 %v548_v21, %v157_v20 }
 0x680   :  { %v550_v23 = vpop.f32.mrf.mxu1 }
 0x681   :  { %v1178_v24 = vmul.f32 -1.442695, %v555_v22  ;;  %v556_v30 = vadd.f32 %v550_v23, %v159_v27  ;;  %v167_v27 = vadd.f32 %v1583_v37, %v1520_v18 }
 0x682   :  { %v552_v25 = vpop.f32.mrf.mxu1 }
 0x683   :  { %1296 = vpow2.f32 %v1178_v24  ;;  %v1179_v33 = vmul.f32 -1.442695, %v556_v30 }
 0x684   :  { %v553_v26 = vpop.f32.mrf.mxu1  ;;  %1298 = vtanh.f32 %v556_v30 }
 0x690   :  { %v1297_v31 = vpop.eup %1296 }
 0x691   :  { %v563_v32 = vadd.f32 1.0, %v1297_v31  ;;  %v1299_v45 = vpop.eup %1298 }
 0x693   :  { %1300 = vrcp.f32 %v563_v32 }
 0x694   :  { %1302 = vpow2.f32 %v1179_v33  ;;  %v169_v33 = vadd.f32 %v1585_v38, %v1523_v28 }
 0x6a0   :  { %v1301_v47 = vpop.eup %1300 }
 0x6a1   :  { %v571_v48 = vmul.f32 %v1301_v47, %v1299_v45  ;;  %v1303_v49 = vpop.eup %1302  ;;  %v570_v51 = vmul.f32 %v1301_v47, %v497_v13 }
 0x6a2   :  { %v564_v50 = vadd.f32 1.0, %v1303_v49 }
 0x6a3   :  { %573 = vrot.lane.b32.xlu1 %v571_v48, %s1416_s7 }
 0x6a4   :  { %1304 = vrcp.f32 %v564_v50 }
 0x6b1   :  { %v1305_v34 = vpop.eup %1304 }
 0x715   :  { %v574_v52 = vpop.permute.xlu1 %573 }
 0x716   :  { %v576_v53 = vadd.f32 %v574_v52, %v570_v51 }
 0x718   :  { %1306 = vtanh.f32 %v576_v53 }
 0x725   :  { %v1307_v54 = vpop.eup %1306 }
 0x726   :  { %v1632_v55 = vmul.f32 %v1307_v54, %v1305_v34 }
 0x728   :  { %v586_v56 = vpack.c.bf16 %v1632_v55, %v1632_v55 }
 0x72a   :  { %588 = vrot.lane.b32.xlu0 %v586_v56, %s1416_s7 }
 0x79c   :  { %v589_v57 = vpop.permute.xlu0 %588 }
 0x79d   :  { %1180 = vmatmul.mubr.msk.bf16.vlgmr.msra.gmra.mxu0 %vm263_vm1, %v589_v57 }
 0x79e   :  { %760 = vmatpush1.bf16.msra.mxu0 %v1457_v2  ;;  %783 = vmatprep.mubr.bf16.mxu0 %v1415_v0 }
 0x79f   :  { %761 = vmatprep.subr.bf16.mxu0 %v1464_v4 }
 0x7a2   :  { %762 = vmatpush1.bf16.msra.mxu0 %v1469_v6 }
 0x7a3   :  { %763 = vmatprep.subr.bf16.mxu0 %v1475_v8 }
 0x7a6   :  { %764 = vmatpush1.bf16.msra.mxu0 %v1479_v9 }
 0x7a7   :  { %765 = vmatprep.subr.bf16.mxu0 %v1483_v10 }
 0x7aa   :  { %766 = vmatpush1.bf16.msra.mxu0 %v1485_v11 }
 0x7ab   :  { %917 = vmatprep.subr.bf16.mxu0 %v1455_v1 }
 0x85d   :  { %v627_v59 = vpop.f32.mrf.mxu0 }
 0x85e   :  { %v634_v60 = vadd.f32 %v627_v59, %v163_v58 }
 0x85f   :  { %v629_v61 = vpop.f32.mrf.mxu0 }
 0x860   :  { %v1181_v62 = vmul.f32 -1.442695, %v634_v60  ;;  %v635_v7 = vadd.f32 %v629_v61, %v165_v5 }
 0x861   :  { %v631_v63 = vpop.f32.mrf.mxu0 }
 0x862   :  { %1308 = vpow2.f32 %v1181_v62  ;;  %v1182_v35 = vmul.f32 -1.442695, %v635_v7 }
 0x863   :  { %v632_v3 = vpop.f32.mrf.mxu0  ;;  %1310 = vtanh.f32 %v635_v7 }
 0x864   :  { %v173_v3 = vadd.f32 %v1587_v39, %v1520_v18 }
 0x86f   :  { %v1309_v12 = vpop.eup %1308 }
 0x870   :  { %v642_v13 = vadd.f32 1.0, %v1309_v12  ;;  %v1311_v14 = vpop.eup %1310 }
 0x872   :  { %1312 = vrcp.f32 %v642_v13 }
 0x873   :  { %1314 = vpow2.f32 %v1182_v35 }
 0x87f   :  { %v1313_v1 = vpop.eup %1312 }
 0x880   :  { %v650_v15 = vmul.f32 %v1313_v1, %v1311_v14  ;;  %v1315_v17 = vpop.eup %1314  ;;  %v649_v20 = vmul.f32 %v1313_v1, %v576_v53 }
 0x881   :  { %v643_v19 = vadd.f32 1.0, %v1315_v17 }
 0x882   :  { %652 = vrot.lane.b32.xlu1 %v650_v15, %s1416_s7 }
 0x883   :  { %1316 = vrcp.f32 %v643_v19 }
 0x890   :  { %v1317_v36 = vpop.eup %1316 }
 0x8f4   :  { %v653_v21 = vpop.permute.xlu1 %652 }
 0x8f5   :  { %v655_v22 = vadd.f32 %v653_v21, %v649_v20 }
 0x8f7   :  { %1318 = vtanh.f32 %v655_v22 }
 0x904   :  { %v1319_v23 = vpop.eup %1318 }
 0x905   :  { %v1652_v24 = vmul.f32 %v1319_v23, %v1317_v36  ;;  %v177_v23 = vadd.f32 %v1591_v41, %v1520_v18 }
 0x907   :  { %v665_v25 = vpack.c.bf16 %v1652_v24, %v1652_v24 }
 0x909   :  { %667 = vrot.lane.b32.xlu0 %v665_v25, %s1416_s7 }
 0x97b   :  { %v668_v26 = vpop.permute.xlu0 %667 }
 0x97c   :  { %1183 = vmatmul.mubr.msk.bf16.vlgmr.msra.gmra.mxu1 %vm263_vm1, %v668_v26 }
 0x97d   :  { %839 = vmatpush1.bf16.msra.mxu1 %v1457_v2  ;;  %862 = vmatprep.mubr.bf16.mxu1 %v1415_v0 }
 0x97e   :  { %840 = vmatprep.subr.bf16.mxu1 %v1464_v4 }
 0x981   :  { %841 = vmatpush1.bf16.msra.mxu1 %v1469_v6 }
 0x982   :  { %842 = vmatprep.subr.bf16.mxu1 %v1475_v8 }
 0x985   :  { %843 = vmatpush1.bf16.msra.mxu1 %v1479_v9 }
 0x986   :  { %844 = vmatprep.subr.bf16.mxu1 %v1483_v10 }
 0x989   :  { %845 = vmatpush1.bf16.msra.mxu1 %v1485_v11 }
 0xa3c   :  { %v706_v30 = vpop.f32.mrf.mxu1 }
 0xa3d   :  { %v713_v31 = vadd.f32 %v706_v30, %v167_v27 }
 0xa3e   :  { %v708_v32 = vpop.f32.mrf.mxu1 }
 0xa3f   :  { %v1184_v45 = vmul.f32 -1.442695, %v713_v31  ;;  %v714_v49 = vadd.f32 %v708_v32, %v169_v33 }
 0xa40   :  { %v710_v47 = vpop.f32.mrf.mxu1 }
 0xa41   :  { %1320 = vpow2.f32 %v1184_v45  ;;  %v1185_v37 = vmul.f32 -1.442695, %v714_v49  ;;  %v179_v45 = vadd.f32 %v1593_v42, %v1523_v28 }
 0xa42   :  { %v711_v48 = vpop.f32.mrf.mxu1  ;;  %1322 = vtanh.f32 %v714_v49 }
 0xa4e   :  { %v1321_v50 = vpop.eup %1320 }
 0xa4f   :  { %v721_v51 = vadd.f32 1.0, %v1321_v50  ;;  %v1323_v52 = vpop.eup %1322 }
 0xa51   :  { %1324 = vrcp.f32 %v721_v51 }
 0xa52   :  { %1326 = vpow2.f32 %v1185_v37 }
 0xa5e   :  { %v1325_v53 = vpop.eup %1324 }
 0xa5f   :  { %v729_v34 = vmul.f32 %v1325_v53, %v1323_v52  ;;  %v1327_v54 = vpop.eup %1326  ;;  %v728_v57 = vmul.f32 %v1325_v53, %v655_v22 }
 0xa60   :  { %v722_v56 = vadd.f32 1.0, %v1327_v54 }
 0xa61   :  { %731 = vrot.lane.b32.xlu1 %v729_v34, %s1416_s7 }
 0xa62   :  { %1328 = vrcp.f32 %v722_v56 }
 0xa6f   :  { %v1329_v38 = vpop.eup %1328 }
 0xad3   :  { %v732_v58 = vpop.permute.xlu1 %731 }
 0xad4   :  { %v734_v59 = vadd.f32 %v732_v58, %v728_v57 }
 0xad6   :  { %1330 = vtanh.f32 %v734_v59 }
 0xae3   :  { %v1331_v60 = vpop.eup %1330 }
 0xae4   :  { %v1671_v61 = vmul.f32 %v1331_v60, %v1329_v38 }
 0xae6   :  { %v744_v62 = vpack.c.bf16 %v1671_v61, %v1671_v61 }
 0xae8   :  { %746 = vrot.lane.b32.xlu0 %v744_v62, %s1416_s7 }
 0xb5a   :  { %v747_v63 = vpop.permute.xlu0 %746 }
 0xb5b   :  { %1186 = vmatmul.mubr.msk.bf16.vlgmr.msra.gmra.mxu0 %vm263_vm1, %v747_v63 }
 0xb5c   :  { %918 = vmatpush1.bf16.msra.mxu0 %v1457_v2  ;;  %941 = vmatprep.mubr.bf16.mxu0 %v1415_v0 }
 0xb5d   :  { %919 = vmatprep.subr.bf16.mxu0 %v1464_v4 }
 0xb60   :  { %920 = vmatpush1.bf16.msra.mxu0 %v1469_v6  ;;  %v175_v6 = vadd.f32 %v1589_v40, %v1523_v28 }
 0xb61   :  { %921 = vmatprep.subr.bf16.mxu0 %v1475_v8 }
 0xb64   :  { %922 = vmatpush1.bf16.msra.mxu0 %v1479_v9 }
 0xb65   :  { %923 = vmatprep.subr.bf16.mxu0 %v1483_v10 }
 0xb68   :  { %924 = vmatpush1.bf16.msra.mxu0 %v1485_v11 }
 0xc1b   :  { %v785_v5 = vpop.f32.mrf.mxu0 }
 0xc1c   :  { %v792_v7 = vadd.f32 %v785_v5, %v173_v3 }
 0xc1d   :  { %v787_v2 = vpop.f32.mrf.mxu0 }
 0xc1e   :  { %v1187_v12 = vmul.f32 -1.442695, %v792_v7  ;;  %v793_v8 = vadd.f32 %v787_v2, %v175_v6 }
 0xc1f   :  { %v789_v0 = vpop.f32.mrf.mxu0 }
 0xc20   :  { %1332 = vpow2.f32 %v1187_v12  ;;  %v1188_v39 = vmul.f32 -1.442695, %v793_v8  ;;  %v185_v12 = vadd.f32 %v1597_v44, %v1523_v28 }
 0xc21   :  { %v790_v4 = vpop.f32.mrf.mxu0  ;;  %1334 = vtanh.f32 %v793_v8  ;;  %v1256_v8 = vld [vmem:[#allocation4 + $0x50] ss:$12 sps:$4 sm:$0xff]  }
 0xc22   :  { %1212 = vmatprep.subr.bf16.mxu1 %v1256_v8 }
 0xc2d   :  { %v1333_v13 = vpop.eup %1332 }
 0xc2e   :  { %v800_v9 = vadd.f32 1.0, %v1333_v13  ;;  %v1335_v10 = vpop.eup %1334  ;;  %v1257_v13 = vld [vmem:[#allocation4 + $0x38] ss:$12 sps:$4 sm:$0xff]  }
 0xc30   :  { %1336 = vrcp.f32 %v800_v9 }
 0xc31   :  { %1338 = vpow2.f32 %v1188_v39 }
 0xc3d   :  { %v1337_v11 = vpop.eup %1336 }
 0xc3e   :  { %v808_v14 = vmul.f32 %v1337_v11, %v1335_v10  ;;  %v1339_v1 = vpop.eup %1338  ;;  %v807_v35 = vmul.f32 %v1337_v11, %v734_v59  ;;  %v1259_v11 = vld [vmem:[#allocation4 + $0x8] ss:$12 sps:$4 sm:$0xff]  }
 0xc3f   :  { %v801_v15 = vadd.f32 1.0, %v1339_v1 }
 0xc40   :  { %810 = vrot.lane.b32.xlu1 %v808_v14, %s1416_s7 }
 0xc41   :  { %1340 = vrcp.f32 %v801_v15 }
 0xc4e   :  { %v1341_v40 = vpop.eup %1340 }
 0xcb2   :  { %v811_v17 = vpop.permute.xlu1 %810 }
 0xcb3   :  { %v813_v19 = vadd.f32 %v811_v17, %v807_v35 }
 0xcb5   :  { %1342 = vtanh.f32 %v813_v19 }
 0xcc2   :  { %v1343_v20 = vpop.eup %1342 }
 0xcc3   :  { %v1690_v21 = vmul.f32 %v1343_v20, %v1341_v40 }
 0xcc5   :  { %v823_v22 = vpack.c.bf16 %v1690_v21, %v1690_v21 }
 0xcc7   :  { %825 = vrot.lane.b32.xlu0 %v823_v22, %s1416_s7 }
 0xd39   :  { %v826_v36 = vpop.permute.xlu0 %825 }
 0xd3a   :  { %1189 = vmatmul.mubr.msk.bf16.vlgmr.msra.gmra.mxu1 %vm263_vm1, %v826_v36 }
 0xd3b   :  { %1213 = vmatpush3.bf16.msra.mxu1 %v1256_v8 }
 0xd3c   :  { %1214 = vmatprep.subr.bf16.mxu1 %v1257_v13 }
 0xd3f   :  { %1215 = vmatpush3.bf16.msra.mxu1 %v1257_v13 }
 0xdfa   :  { %v864_v25 = vpop.f32.mrf.mxu1 }
 0xdfb   :  { %v871_v26 = vadd.f32 %v864_v25, %v177_v23 }
 0xdfc   :  { %v866_v27 = vpop.f32.mrf.mxu1 }
 0xdfd   :  { %v1190_v30 = vmul.f32 -1.442695, %v871_v26  ;;  %v872_v47 = vadd.f32 %v866_v27, %v179_v45 }
 0xdfe   :  { %v868_v31 = vpop.f32.mrf.mxu1 }
 0xdff   :  { %1344 = vpow2.f32 %v1190_v30  ;;  %v1191_v41 = vmul.f32 -1.442695, %v872_v47 }
 0xe00   :  { %v869_v32 = vpop.f32.mrf.mxu1  ;;  %1346 = vtanh.f32 %v872_v47 }
 0xe0c   :  { %v1345_v48 = vpop.eup %1344 }
 0xe0d   :  { %v879_v33 = vadd.f32 1.0, %v1345_v48  ;;  %v1347_v49 = vpop.eup %1346 }
 0xe0f   :  { %1348 = vrcp.f32 %v879_v33 }
 0xe10   :  { %1350 = vpow2.f32 %v1191_v41 }
 0xe1c   :  { %v1349_v50 = vpop.eup %1348 }
 0xe1d   :  { %v887_v51 = vmul.f32 %v1349_v50, %v1347_v49  ;;  %v1351_v52 = vpop.eup %1350  ;;  %v886_v34 = vmul.f32 %v1349_v50, %v813_v19 }
 0xe1e   :  { %v880_v53 = vadd.f32 1.0, %v1351_v52 }
 0xe1f   :  { %889 = vrot.lane.b32.xlu1 %v887_v51, %s1416_s7  ;;  %v1195_v51 = vld [vmem:[%s1758_s4 + $0x2] ss:$0 sm:$0xff]  ;;  %s1417_s4 = smov [#allocation7]  }
 0xe20   :  { %1352 = vrcp.f32 %v880_v53  ;;  %s1136_s17 = sshll.u32 %s1417_s4, 4  ;;  %s1137_s17 = int_to_ptr.vmem [resolvable:$true] %s1136_s17 }
 0xe21   :  { %s1388_s18 = scalar_lea.vmem %s1137_s17, 1152  ;;  %p1393_p6 = scmp.lt.s32.totalorder %s1137_s17, %s1137_s17 }
 0xe22   :  { %p1389_p5 = scmp.ne.s32.totalorder %s1137_s17, %s1388_s18  ;;  %p1394_p7 = scmp.lt.s32.totalorder %s1388_s18, %s1388_s18 }
 0xe24   :  { %p1395_p8 = por %p1394_p7, %p1393_p6 }
 0xe26   :  { %p1396_p9 = pnand %p1395_p8, %p1389_p5 }
 0xe2d   :  { %v1353_v42 = vpop.eup %1352 }
 0xe91   :  { %v890_v37 = vpop.permute.xlu1 %889 }
 0xe92   :  { %v1701_v54 = vadd.f32 %v890_v37, %v886_v34 }
 0xe94   :  { %1354 = vtanh.f32 %v1701_v54 }
 0xea1   :  { %v1355_v56 = vpop.eup %1354 }
 0xea2   :  { %v894_v57 = vmul.f32 %v1355_v56, %v1353_v42 }
 0xea4   :  { %v902_v58 = vpack.c.bf16 %v894_v57, %v894_v57 }
 0xea6   :  { %904 = vrot.lane.b32.xlu0 %v902_v58, %s1416_s7 }
 0xeaa   :  { %422 = vrot.lane.b32.xlu0 %v1570_v29, %s1416_s7 }
 0xeae   :  { %580 = vrot.lane.b32.xlu0 %v1632_v55, %s1416_s7  ;;  %v183_v55 = vadd.f32 %v1595_v43, %v1520_v18  ;;  %v1258_v18 = vld [vmem:[#allocation4 + $0x20] ss:$12 sps:$4 sm:$0xff]  }
 0xeaf   :  { %1216 = vmatprep.subr.bf16.mxu1 %v1258_v18 }
 0xeb0   :  { %1217 = vmatpush3.bf16.msra.mxu1 %v1258_v18 }
 0xeb1   :  { %1218 = vmatprep.subr.bf16.mxu1 %v1259_v11 }
 0xeb2   :  { %738 = vrot.lane.b32.xlu0 %v1671_v61, %s1416_s7 }
 0xeb4   :  { %1219 = vmatpush3.bf16.msra.mxu1 %v1259_v11 }
 0xeb6   :  { %896 = vrot.lane.b32.xlu0 %v894_v57, %s1416_s7 }
 0xf18   :  { %v905_v59 = vpop.permute.xlu0 %904 }
 0xf19   :  { %1192 = vmatmul.mubr.msk.bf16.vlgmr.msra.gmra.mxu0 %vm263_vm1, %v905_v59 }
 0xf1c   :  { %v423_v38 = vpop.permute.xlu0 %422 }
 0xf1d   :  { %425 = vst.msk [vmem:[#allocation3] sm:$0xff] %vm263_vm1, %v423_v38 }
 0xf20   :  { %v581_v60 = vpop.permute.xlu0 %580 }
 0xf21   :  { %583 = vst.msk [vmem:[#allocation3 + $0x10] sm:$0xff] %vm263_vm1, %v581_v60 }
 0xf24   :  { %v739_v62 = vpop.permute.xlu0 %738  ;;  %v998_v17 = vld [vmem:[#allocation3] sm:$0xff] }
 0xf25   :  { %741 = vst.msk [vmem:[#allocation3 + $0x20] sm:$0xff] %vm263_vm1, %v739_v62 }
 0xf28   :  { %v1716_v29 = vpop.permute.xlu0 %896  ;;  %v1000_v22 = vld [vmem:[#allocation3 + $0x10] sm:$0xff] }
 0xf29   :  { %899 = vst.msk [vmem:[#allocation3 + $0x30] sm:$0xff] %vm263_vm1, %v1716_v29 }
 0xf2c   :  { %v1002_v26 = vld [vmem:[#allocation3 + $0x20] sm:$0xff] }
 0xf30   :  { %v1004_v33 = vld [vmem:[#allocation3 + $0x30] sm:$0xff] }
 0xfd9   :  { %v943_v61 = vpop.f32.mrf.mxu0 }
 0xfda   :  { %v950_v63 = vadd.f32 %v943_v61, %v183_v55 }
 0xfdb   :  { %v945_v3 = vpop.f32.mrf.mxu0 }
 0xfdc   :  { %v1193_v5 = vmul.f32 -1.442695, %v950_v63  ;;  %v951_v0 = vadd.f32 %v945_v3, %v185_v12 }
 0xfdd   :  { %v947_v7 = vpop.f32.mrf.mxu0 }
 0xfde   :  { %1356 = vpow2.f32 %v1193_v5  ;;  %v1194_v28 = vmul.f32 -1.442695, %v951_v0 }
 0xfdf   :  { %v948_v2 = vpop.f32.mrf.mxu0  ;;  %1358 = vtanh.f32 %v951_v0 }
 0xfeb   :  { %v1357_v4 = vpop.eup %1356 }
 0xfec   :  { %v958_v6 = vadd.f32 1.0, %v1357_v4  ;;  %v1359_v43 = vpop.eup %1358 }
 0xfee   :  { %1360 = vrcp.f32 %v958_v6 }
 0xfef   :  { %1362 = vpow2.f32 %v1194_v28 }
 0xffb   :  { %v1361_v9 = vpop.eup %1360 }
 0xffc   :  { %v966_v10 = vmul.f32 %v1361_v9, %v1359_v43  ;;  %v1363_v44 = vpop.eup %1362  ;;  %v965_v39 = vmul.f32 %v1361_v9, %v1701_v54 }
 0xffd   :  { %v959_v14 = vadd.f32 1.0, %v1363_v44 }
 0xffe   :  { %968 = vrot.lane.b32.xlu1 %v966_v10, %s1416_s7 }
 0xfff   :  { %1364 = vrcp.f32 %v959_v14 }
0x1002   :  { %501 = vrot.lane.b32.xlu1 %v1612_v16, %s1416_s7 }
0x1006   :  { %659 = vrot.lane.b32.xlu1 %v1652_v24, %s1416_s7 }
0x100a   :  { %817 = vrot.lane.b32.xlu1 %v1690_v21, %s1416_s7 }
0x100c   :  { %v1365_v20 = vpop.eup %1364 }
0x1070   :  { %v969_v1 = vpop.permute.xlu1 %968 }
0x1071   :  { %v971_v15 = vadd.f32 %v969_v1, %v965_v39 }
0x1073   :  { %1366 = vtanh.f32 %v971_v15  ;;  %975 = vrot.lane.b32.xlu0 %v971_v15, %s1416_s7 }
0x1074   :  { %v502_v35 = vpop.permute.xlu1 %501 }
0x1075   :  { %504 = vst.msk [vmem:[#allocation3 + $0x8] sm:$0xff] %vm263_vm1, %v502_v35 }
0x1078   :  { %v660_v16 = vpop.permute.xlu1 %659 }
0x1079   :  { %662 = vst.msk [vmem:[#allocation3 + $0x18] sm:$0xff] %vm263_vm1, %v660_v16 }
0x107c   :  { %v818_v24 = vpop.permute.xlu1 %817  ;;  %v999_v19 = vld [vmem:[#allocation3 + $0x8] sm:$0xff] }
0x107d   :  { %820 = vst.msk [vmem:[#allocation3 + $0x28] sm:$0xff] %vm263_vm1, %v818_v24  ;;  %v1006_v40 = vpack.c.bf16 %v999_v19, %v998_v17 }
0x107f   :  { %1220 = vmatprep.mubr.msk.bf16.mxu1 %vm263_vm1, %v1006_v40 }
0x1080   :  { %v1367_v21 = vpop.eup %1366  ;;  %v1001_v36 = vld [vmem:[#allocation3 + $0x18] sm:$0xff] }
0x1081   :  { %v1007_v23 = vpack.c.bf16 %v1001_v36, %v1000_v22  ;;  %v973_v25 = vmul.f32 %v1367_v21, %v1365_v20 }
0x1083   :  { %1221 = vmatmul.mubr.msk.bf16.vlgmr.msra.gmra.mxu1 %vm263_vm1, %v1007_v23  ;;  %984 = vrot.lane.b32.xlu1 %v973_v25, %s1416_s7 }
0x1084   :  { %v1003_v27 = vld [vmem:[#allocation3 + $0x28] sm:$0xff] }
0x1085   :  { %v1008_v30 = vpack.c.bf16 %v1003_v27, %v1002_v26 }
0x1087   :  { %1224 = vmatprep.mubr.msk.bf16.mxu1 %vm263_vm1, %v1008_v30  ;;  %979 = vrot.lane.b32.xlu1 %v1701_v54, %s1416_s7 }
0x10e5   :  { %v976_v45 = vpop.permute.xlu0 %975 }
0x10f5   :  { %v985_v31 = vpop.permute.xlu1 %984 }
0x10f6   :  { %v987_v32 = vsel %vm219_vm3, %v985_v31, %v1716_v29 }
0x10f7   :  { %988 = vst.msk [vmem:[#allocation3 + $0x38] sm:$0xff] %vm263_vm1, %v987_v32 }
0x10f9   :  { %v980_v47 = vpop.permute.xlu1 %979 }
0x10fa   :  { %v982_v48 = vsel %vm219_vm3, %v976_v45, %v980_v47 }
0x10fb   :  { %1126 = vrot.lane.b32.xlu0 %v982_v48, %s1416_s7 }
0x10fe   :  { %v1005_v49 = vld [vmem:[#allocation3 + $0x38] sm:$0xff] }
0x10ff   :  { %v1009_v50 = vpack.c.bf16 %v1005_v49, %v1004_v33 }
0x1101   :  { %1225 = vmatmul.mubr.msk.bf16.gmra.mxu1 %vm263_vm1, %v1009_v50 }
0x1143   :  { %v1222_v46 = vpop.f32.mrf.mxu1 }
0x1144   :  { %v1095_v41 = vadd.f32 %v1222_v46, %v1195_v51 }
0x1145   :  { %v1086_v52 = vpop.f32.mrf.mxu1 }
0x1146   :  { %1119 = vst [vmem:[#allocation7 + $0x10] sm:$0xff] %v1095_v41  ;;  %v1087_v53 = vadd.f32 %v1195_v51, %v1086_v52 }
0x1147   :  { %v1223_v34 = vpop.f32.mrf.mxu1 }
0x1148   :  { %1117 = vst [vmem:[#allocation7] sm:$0xff] %v1087_v53  ;;  %v1098_v37 = vadd.f32 %v1223_v34, %v1195_v51 }
0x1149   :  { %v1089_v54 = vpop.f32.mrf.mxu1 }
0x114a   :  { %1120 = vst [vmem:[#allocation7 + $0x18] sm:$0xff] %v1098_v37  ;;  %v1090_v42 = vadd.f32 %v1195_v51, %v1089_v54 }
0x114c   :  { %1118 = vst [vmem:[#allocation7 + $0x8] sm:$0xff] %v1090_v42 }
0x116d   :  { %v1127_v56 = vpop.permute.xlu0 %1126 }
0x116e   :  { %v1129_v57 = vsel %vm263_vm1, %v987_v32, %v1127_v56 }
0x116f   :  { %1130 = vst [vmem:[#allocation7 + $0x40] sm:$0xff] %v1129_v57 }
0x11c1   :  { %v1226_v58 = vpop.f32.mrf.mxu1 }
0x11c2   :  { %v1111_v59 = vadd.f32 %v1226_v58, %v1195_v51 }
0x11c3   :  { %v1102_v38 = vpop.f32.mrf.mxu1 }
0x11c4   :  { %1123 = vst [vmem:[#allocation7 + $0x30] sm:$0xff] %v1111_v59  ;;  %v1103_v60 = vadd.f32 %v1195_v51, %v1102_v38 }
0x11c5   :  { %v1227_v62 = vpop.f32.mrf.mxu1 }
0x11c6   :  { %1121 = vst [vmem:[#allocation7 + $0x20] sm:$0xff] %v1103_v60  ;;  %v1114_v29 = vadd.f32 %v1227_v62, %v1195_v51 }
0x11c7   :  { %v1105_v55 = vpop.f32.mrf.mxu1 }
0x11c8   :  { %1124 = vst [vmem:[#allocation7 + $0x38] sm:$0xff] %v1114_v29  ;;  %v1106_v61 = vadd.f32 %v1195_v51, %v1105_v55 }
0x11ca   :  { %1122 = vst [vmem:[#allocation7 + $0x28] sm:$0xff] %v1106_v61 }
0x11cb   :  { %1399 = shalt.err (!%p1396_p9)
}
0x11cc   :  { %s1418_s19 = smov 128   ;;  %s1419_s20 = smov 8  }
0x11cd   :  { %1142 = dma.vmem_to_hbm [thread:$0]  %s1137_s17, 1152, %s1759_s5, [#allocation6], %s1418_s19, %s1418_s19, %s1419_s20  }
0x11ce   :  { %1410 = dma.done.wait [#allocation6], 1152  }
0x11cf   :  { %1411 = vsyncadd [#allocation6], 4294966144 }
0x11d0   :  { %1146 = vsyncpa [#allocation5], 1 }
0x11d1   :  { %1147 = vsyncpa [#allocation6], 1 }

</bundles_post_ra>
